<compile_context>
chip_gen: v6e
topology: v6e:2x2x1
jax: 0.10.0
libtpu: 0.0.40
codegen_flags: <defaults>
</compile_context>

<pallas_src>
import functools
import math

import jax
import jax.numpy as jnp
from jax.experimental import pallas as pl
from jax.experimental.pallas import tpu as pltpu


# --------------------------------------------------------------------------- #
# Kernel
# --------------------------------------------------------------------------- #
def _self_attn_kernel(x_ref, wqkv_ref, bqkv_ref, wo_ref, bo_ref,
                      ln_w_ref, ln_b_ref, o_ref, *,
                      seq_len, batch_block, num_heads, head_dim,
                      matmul_dtype, approx_recip, use_einshape, eps):
    L, bb, H, Dh = seq_len, batch_block, num_heads, head_dim
    E = H * Dh
    rows = L * bb                                  # rows are l-major: r = l*bb + b

    x = x_ref[...].reshape(rows, E)                # (rows, E) f32

    # Fused QKV projection.  1/sqrt(Dh) is folded into the Q weights host-side.
    qkv = jnp.dot(x.astype(matmul_dtype), wqkv_ref[...].astype(matmul_dtype),
                  preferred_element_type=jnp.float32) + bqkv_ref[...]  # (rows, 3E)
    q = qkv[:, 0:E]
    k = qkv[:, E:2 * E]
    v = qkv[:, 2 * E:3 * E]

    # ---- head/batch-major layout: (rows, E) -> (bb*H, L, Dh), batch = b*H + h
    def to_heads(t):
        t = t.astype(matmul_dtype).reshape(L, bb, H, Dh)
        if use_einshape:
            t = pltpu.einshape("lbhd->bhld", t)              # one lane-aware relayout
        else:
            # Fallback: supported-everywhere slice/stack relayout.
            t3 = t.reshape(L, bb, E)
            tb = jnp.stack([t3[:, b, :] for b in range(bb)], axis=0)   # (bb, L, E)
            t = jnp.stack([tb[:, :, h * Dh:(h + 1) * Dh] for h in range(H)],
                          axis=1)                                       # (bb, H, L, Dh)
        return t.reshape(bb * H, L, Dh)

    def from_heads(c):                                        # (bb*H, L, Dh) -> (rows, E)
        c = c.reshape(bb, H, L, Dh)
        if use_einshape:
            c = pltpu.einshape("bhld->lbhd", c)
            return c.reshape(rows, E)
        ce = jnp.concatenate([c[:, h] for h in range(H)], axis=-1)      # (bb, L, E)
        cl = jnp.stack([ce[b] for b in range(bb)], axis=1)              # (L, bb, E)
        return cl.reshape(rows, E)

    qh = to_heads(q)
    kh = to_heads(k)
    vh = to_heads(v)

    # ---- scaled-dot-product attention: two batched MXU contractions + softmax
    s = jnp.einsum('bld,bmd->blm', qh, kh,
                   preferred_element_type=jnp.float32)        # (bb*H, L, L) f32
    s = s - jnp.max(s, axis=-1, keepdims=True)
    p = jnp.exp(s)
    denom = jnp.sum(p, axis=-1, keepdims=True)
    if approx_recip:
        p = p * pl.reciprocal(denom, approx=True)             # EUP slot (~free)
    else:
        p = p / denom
    ctx = jnp.einsum('blm,bmd->bld', p.astype(matmul_dtype), vh,
                     preferred_element_type=jnp.float32)      # (bb*H, L, Dh)

    ctx = from_heads(ctx)                                     # (rows, E)

    # ---- output projection + residual + LayerNorm (Dropout(0.1) == identity)
    attn = jnp.dot(ctx.astype(matmul_dtype), wo_ref[...].astype(matmul_dtype),
                   preferred_element_type=jnp.float32) + bo_ref[...]
    y = x + attn
    mean = jnp.mean(y, axis=-1, keepdims=True)
    var = jnp.mean(y * y, axis=-1, keepdims=True) - mean * mean   # single pass
    out = (y - mean) * jax.lax.rsqrt(var + eps) * ln_w_ref[...] + ln_b_ref[...]

    o_ref[...] = out.reshape(L, bb, E).astype(o_ref.dtype)


# --------------------------------------------------------------------------- #
# Sizing helpers (per-generation VMEM / batch-block selection)
# --------------------------------------------------------------------------- #
def _vmem_capacity_bytes():
    try:
        info = pltpu.get_tpu_info()
        for attr in ("vmem_capacity_bytes", "vmem_size_bytes", "vmem_bytes"):
            val = getattr(info, attr, None)
            if val:
                return int(val)
    except Exception:
        pass
    return 128 * 1024 * 1024          # v5e/v6e default; v7x reports 64 MiB above


def _working_set_bytes(L, bb, E, H, Dh, md_bytes, single_buffer_weights):
    f32, rows = 4, L * bb
    act = rows * 3 * E * f32                       # fused qkv
    act += 3 * H * bb * L * Dh * md_bytes          # qh / kh / vh
    act += 2 * H * bb * L * L * f32                # scores + probs (L^2 term)
    act += H * bb * L * Dh * f32                   # ctx
    act += 3 * rows * E * f32                      # attn / y / out temporaries
    io = 2 * 2 * rows * E * f32                    # double-buffered x + out blocks
    wbytes = (3 * E * E + E * E) * md_bytes + 6 * E * f32
    return act + io + wbytes * (1 if single_buffer_weights else 2)


def _pick_batch_block(N, L, E, H, Dh, md_bytes, budget, target_blocks=2):
    """Largest batch block that keeps the sublane dim 8-aligned (or == N), fits
    the VMEM budget, and if possible leaves >= target_blocks grid steps so
    v7x's second TensorCore gets work and DMA overlaps compute everywhere."""
    divisors = [d for d in range(N, 0, -1) if N % d == 0]
    aligned = [bb for bb in divisors if bb == N or bb % 8 == 0]
    fitting = [bb for bb in aligned
               if _working_set_bytes(L, bb, E, H, Dh, md_bytes, True) <= budget]
    if not fitting:
        fitting = [aligned[-1]]
    multi = [bb for bb in fitting if (N // bb) >= target_blocks]
    return max(multi) if multi else max(fitting)


# --------------------------------------------------------------------------- #
# Wrapper
# --------------------------------------------------------------------------- #
def self_attention_forward(x, params, *, num_heads, batch_block=None,
                           matmul_dtype=jnp.float32, approx_reciprocal=True,
                           eps=1e-5):
    """x: (L, N, E) float32, seq-first (PyTorch batch_first=False) -> (L, N, E).

    matmul_dtype=jnp.bfloat16 roughly doubles MXU throughput and halves weight
    HBM traffic on v5e, v6e and v7x alike (f32 accumulation, f32 softmax/LN).
    """
    L, N, E = x.shape
    assert E % num_heads == 0
    head_dim = E // num_heads
    md_bytes = jnp.dtype(matmul_dtype).itemsize

    cap = _vmem_capacity_bytes()
    budget = int(cap * 0.85)                       # headroom for Mosaic scratch

    if batch_block is None:
        batch_block = _pick_batch_block(N, L, E, num_heads, head_dim,
                                        md_bytes, budget)
    assert N % batch_block == 0
    assert batch_block == N or batch_block % 8 == 0, \
        "batch_block must be 8-aligned (sublane dim) or equal to N"
    num_blocks = N // batch_block

    ws = _working_set_bytes(L, batch_block, E, num_heads, head_dim, md_bytes,
                            single_buffer_weights=(num_blocks > 1))
    vmem_limit = int(min(budget, max(32 << 20, 2 * ws + (4 << 20))))

    wqkvT, woT = params["wqkvT"], params["woT"]
    if matmul_dtype != jnp.float32:                # halve weight HBM traffic
        wqkvT = wqkvT.astype(matmul_dtype)
        woT = woT.astype(matmul_dtype)

    xo_spec = pl.BlockSpec((L, batch_block, E), lambda i: (0, i, 0))

    def const_spec(shape, buffered):
        index_map = lambda i: (0,) * len(shape)
        if buffered and num_blocks > 1 and hasattr(pl, "Buffered"):
            # Grid-invariant weights/biases: no point double-buffering blocks
            # whose index_map never changes -> halve their VMEM footprint.
            return pl.BlockSpec(shape, index_map, pipeline_mode=pl.Buffered(1))
        return pl.BlockSpec(shape, index_map)

    def run(use_einshape, buffered_consts):
        kernel = functools.partial(
            _self_attn_kernel,
            seq_len=L, batch_block=batch_block, num_heads=num_heads,
            head_dim=head_dim, matmul_dtype=matmul_dtype,
            approx_recip=approx_reciprocal, use_einshape=use_einshape, eps=eps)
        grid_spec = pltpu.PrefetchScalarGridSpec(
            num_scalar_prefetch=0,
            grid=(num_blocks,),
            in_specs=[
                xo_spec,                                    # x block (L, bb, E)
                const_spec((E, 3 * E), buffered_consts),    # fused [Wq|Wk|Wv]^T
                const_spec((1, 3 * E), buffered_consts),    # fused bias
                const_spec((E, E), buffered_consts),        # Wo^T
                const_spec((1, E), buffered_consts),        # bo
                const_spec((1, E), buffered_consts),        # ln_w
                const_spec((1, E), buffered_consts),        # ln_b
            ],
            out_specs=xo_spec,
        )
        return pl.pallas_call(
            kernel,
            out_shape=jax.ShapeDtypeStruct((L, N, E), jnp.float32),
            grid_spec=grid_spec,
            compiler_params=pltpu.CompilerParams(
                dimension_semantics=("parallel",),
                vmem_limit_bytes=vmem_limit),
        )(x, wqkvT, params["bqkv"], woT, params["bo"],
          params["ln_w"], params["ln_b"])

    # Preferred configuration first; degrade gracefully if pltpu.einshape or
    # pl.Buffered(1) is unsupported on the installed jax version.
    attempts = []
    for use_einshape in (True, False):
        for buffered in ((True, False) if num_blocks > 1 else (False,)):
            attempts.append((use_einshape, buffered))
    last_err = None
    for use_einshape, buffered in attempts:
        try:
            return run(use_einshape, buffered)
        except Exception as e:                     # noqa: BLE001 - fallback ladder
            last_err = e
    raise last_err


# --------------------------------------------------------------------------- #
# Parameters + pure-JAX reference (PyTorch semantics)
# --------------------------------------------------------------------------- #
def make_raw_params(key, embed_dim):
    E = embed_dim
    lim = 1.0 / math.sqrt(E)
    ks = jax.random.split(key, 8)
    u = lambda k, shp: jax.random.uniform(k, shp, jnp.float32, -lim, lim)
    return {
        "wq": u(ks[0], (E, E)), "wk": u(ks[1], (E, E)), "wv": u(ks[2], (E, E)),
        "wo": u(ks[3], (E, E)),
        "bq": u(ks[4], (E,)), "bk": u(ks[5], (E,)), "bv": u(ks[6], (E,)),
        "bo": u(ks[7], (E,)),
        "ln_w": jnp.ones((E,), jnp.float32),
        "ln_b": jnp.zeros((E,), jnp.float32),
    }


def pack_params(raw, num_heads):
    """Fuse/pre-transpose weights for the kernel; fold 1/sqrt(head_dim) into Q."""
    E = raw["wq"].shape[0]
    scale = 1.0 / math.sqrt(E // num_heads)
    wqkvT = jnp.concatenate([raw["wq"].T * scale, raw["wk"].T, raw["wv"].T], axis=1)
    bqkv = jnp.concatenate([raw["bq"] * scale, raw["bk"], raw["bv"]])
    return {
        "wqkvT": wqkvT,                       # (E, 3E):  y = x @ [Wq^T|Wk^T|Wv^T]
        "bqkv": bqkv.reshape(1, 3 * E),
        "woT": raw["wo"].T,
        "bo": raw["bo"].reshape(1, E),
        "ln_w": raw["ln_w"].reshape(1, E),
        "ln_b": raw["ln_b"].reshape(1, E),
    }


def reference_forward(x, raw, num_heads, eps=1e-5):
    L, N, E = x.shape
    H, Dh = num_heads, E // num_heads
    q = jnp.einsum('lne,fe->lnf', x, raw["wq"]) + raw["bq"]
    k = jnp.einsum('lne,fe->lnf', x, raw["wk"]) + raw["bk"]
    v = jnp.einsum('lne,fe->lnf', x, raw["wv"]) + raw["bv"]
    q = q.reshape(L, N, H, Dh)
    k = k.reshape(L, N, H, Dh)
    v = v.reshape(L, N, H, Dh)
    s = jnp.einsum('lnhd,mnhd->nhlm', q, k) / math.sqrt(Dh)
    p = jax.nn.softmax(s, axis=-1)
    ctx = jnp.einsum('nhlm,mnhd->lnhd', p, v).reshape(L, N, E)
    attn = jnp.einsum('lne,fe->lnf', ctx, raw["wo"]) + raw["bo"]
    y = x + attn                                   # Dropout(0.1) eval == identity
    mean = jnp.mean(y, axis=-1, keepdims=True)
    var = jnp.mean((y - mean) ** 2, axis=-1, keepdims=True)
    return (y - mean) / jnp.sqrt(var + eps) * raw["ln_w"] + raw["ln_b"]


# --------------------------------------------------------------------------- #
# Demo / self-check
# --------------------------------------------------------------------------- #
if __name__ == "__main__":
    key = jax.random.PRNGKey(0)

    # Config 1: Alt's attention config (num_heads=1), tiny batch -> single grid
    #           block (batch too small for an 8-aligned split).
    # Config 2: multi-head + multi-block grid (N=16 -> two 8-wide batch blocks),
    #           exercising the "parallel" grid axis and single-buffered weights.
    configs = [
        dict(L=8, N=2, E=32, H=1),
        dict(L=8, N=16, E=32, H=4),
    ]
    for cfg in configs:
        L, N, E, H = cfg["L"], cfg["N"], cfg["E"], cfg["H"]
        key, kx, kp = jax.random.split(key, 3)
        x = jax.random.normal(kx, (L, N, E), jnp.float32)
        raw = make_raw_params(kp, E)
        params = pack_params(raw, num_heads=H)

        out = self_attention_forward(x, params, num_heads=H)
        out = jax.block_until_ready(out)
        assert out.shape == (L, N, E)

        ref = reference_forward(x, raw, num_heads=H)
        err = float(jnp.max(jnp.abs(out - ref)))
        assert err < 5e-2, f"mismatch vs reference (cfg={cfg}): max|diff|={err}"

    print("KERNEL_OK")
</pallas_src>

<mosaic_0001>
module attributes {stable_mosaic.version = 11 : i64} {
  func.func @_self_attn_kernel(%arg0: i32, %arg1: memref<8x2x32xf32, #tpu.memory_space<vmem>>, %arg2: memref<32x96xf32, #tpu.memory_space<vmem>>, %arg3: memref<1x96xf32, #tpu.memory_space<vmem>>, %arg4: memref<32x32xf32, #tpu.memory_space<vmem>>, %arg5: memref<1x32xf32, #tpu.memory_space<vmem>>, %arg6: memref<1x32xf32, #tpu.memory_space<vmem>>, %arg7: memref<1x32xf32, #tpu.memory_space<vmem>>, %arg8: memref<8x2x32xf32, #tpu.memory_space<vmem>>) attributes {dimension_semantics = [#tpu.dimension_semantics<parallel>], iteration_bounds = array<i64: 1>, scalar_prefetch = 0 : i64, scratch_operands = 0 : i64, tpu.core_type = #tpu.core_type<tc>, window_params = [{transform_indices = @transform_0, window_bounds = array<i64: 8, 2, 32>}, {pipeline_mode = #tpu.pipeline_mode<synchronous>, transform_indices = @transform_1, window_bounds = array<i64: 32, 96>}, {pipeline_mode = #tpu.pipeline_mode<synchronous>, transform_indices = @transform_2, window_bounds = array<i64: 1, 96>}, {pipeline_mode = #tpu.pipeline_mode<synchronous>, transform_indices = @transform_3, window_bounds = array<i64: 32, 32>}, {pipeline_mode = #tpu.pipeline_mode<synchronous>, transform_indices = @transform_4, window_bounds = array<i64: 1, 32>}, {pipeline_mode = #tpu.pipeline_mode<synchronous>, transform_indices = @transform_5, window_bounds = array<i64: 1, 32>}, {pipeline_mode = #tpu.pipeline_mode<synchronous>, transform_indices = @transform_6, window_bounds = array<i64: 1, 32>}, {transform_indices = @transform_7, window_bounds = array<i64: 8, 2, 32>}]} {
    %c0 = arith.constant 0 : index
    %c0_0 = arith.constant 0 : index
    %c0_1 = arith.constant 0 : index
    %0 = vector.load %arg1[%c0, %c0_0, %c0_1] : memref<8x2x32xf32, #tpu.memory_space<vmem>>, vector<8x2x32xf32>
    %1 = vector.shape_cast %0 : vector<8x2x32xf32> to vector<16x32xf32>
    %c0_2 = arith.constant 0 : index
    %c0_3 = arith.constant 0 : index
    %2 = vector.load %arg2[%c0_2, %c0_3] : memref<32x96xf32, #tpu.memory_space<vmem>>, vector<32x96xf32>
    %cst = arith.constant dense<0.000000e+00> : vector<16x96xf32>
    %3 = tpu.matmul %1, %2, %cst {dimension_numbers = #tpu.dot_dimension_numbers<[1], [0], [0], [1], [0, 0, 1, 1], [], []>} : vector<16x32xf32>, vector<32x96xf32>, vector<16x96xf32> -> vector<16x96xf32>
    %c0_4 = arith.constant 0 : index
    %c0_5 = arith.constant 0 : index
    %4 = vector.load %arg3[%c0_4, %c0_5] : memref<1x96xf32, #tpu.memory_space<vmem>>, vector<1x96xf32>
    %5 = vector.broadcast %4 : vector<1x96xf32> to vector<16x96xf32>
    %6 = arith.addf %3, %5 : vector<16x96xf32>
    %7 = vector.extract_strided_slice %6 {offsets = [0, 0], sizes = [16, 32], strides = [1, 1]} : vector<16x96xf32> to vector<16x32xf32>
    %8 = vector.extract_strided_slice %6 {offsets = [0, 32], sizes = [16, 32], strides = [1, 1]} : vector<16x96xf32> to vector<16x32xf32>
    %9 = vector.extract_strided_slice %6 {offsets = [0, 64], sizes = [16, 32], strides = [1, 1]} : vector<16x96xf32> to vector<16x32xf32>
    %10 = vector.shape_cast %7 : vector<16x32xf32> to vector<8x2x1x32xf32>
    %11 = tpu.transpose %10, [1, 2, 0, 3] : vector<8x2x1x32xf32> -> vector<2x1x8x32xf32>
    %12 = vector.shape_cast %11 : vector<2x1x8x32xf32> to vector<2x8x32xf32>
    %13 = vector.shape_cast %8 : vector<16x32xf32> to vector<8x2x1x32xf32>
    %14 = tpu.transpose %13, [1, 2, 0, 3] : vector<8x2x1x32xf32> -> vector<2x1x8x32xf32>
    %15 = vector.shape_cast %14 : vector<2x1x8x32xf32> to vector<2x8x32xf32>
    %16 = vector.shape_cast %9 : vector<16x32xf32> to vector<8x2x1x32xf32>
    %17 = tpu.transpose %16, [1, 2, 0, 3] : vector<8x2x1x32xf32> -> vector<2x1x8x32xf32>
    %18 = vector.shape_cast %17 : vector<2x1x8x32xf32> to vector<2x8x32xf32>
    "tpu.trace_start"() <{level = 10 : i32, message = "bld,bmd->blm"}> : () -> ()
    %cst_6 = arith.constant dense<0.000000e+00> : vector<2x8x8xf32>
    %19 = tpu.matmul %12, %15, %cst_6 {dimension_numbers = #tpu.dot_dimension_numbers<[2], [2], [1], [1], [0, 0, 0, 1, 1, 1], [0], [0]>} : vector<2x8x32xf32>, vector<2x8x32xf32>, vector<2x8x8xf32> -> vector<2x8x8xf32>
    "tpu.trace_stop"() : () -> ()
    %cst_7 = arith.constant dense<0xFF800000> : vector<2x8xf32>
    %20 = vector.multi_reduction <maximumf>, %19, %cst_7 [2] : vector<2x8x8xf32> to vector<2x8xf32>
    %21 = vector.shape_cast %20 : vector<2x8xf32> to vector<2x8x1xf32>
    %22 = vector.broadcast %21 : vector<2x8x1xf32> to vector<2x8x8xf32>
    %23 = arith.subf %19, %22 : vector<2x8x8xf32>
    %24 = math.exp %23 : vector<2x8x8xf32>
    %cst_8 = arith.constant dense<0.000000e+00> : vector<2x8xf32>
    %25 = vector.multi_reduction <add>, %24, %cst_8 [2] : vector<2x8x8xf32> to vector<2x8xf32>
    %26 = vector.shape_cast %25 : vector<2x8xf32> to vector<2x8x1xf32>
    %27 = tpu.reciprocal %26 {approx = true} : vector<2x8x1xf32> -> vector<2x8x1xf32>
    %28 = vector.broadcast %27 : vector<2x8x1xf32> to vector<2x8x8xf32>
    %29 = arith.mulf %24, %28 : vector<2x8x8xf32>
    "tpu.trace_start"() <{level = 10 : i32, message = "blm,bmd->bld"}> : () -> ()
    %cst_9 = arith.constant dense<0.000000e+00> : vector<2x8x32xf32>
    %30 = tpu.matmul %29, %18, %cst_9 {dimension_numbers = #tpu.dot_dimension_numbers<[2], [1], [1], [2], [0, 0, 0, 1, 1, 2], [0], [0]>} : vector<2x8x8xf32>, vector<2x8x32xf32>, vector<2x8x32xf32> -> vector<2x8x32xf32>
    "tpu.trace_stop"() : () -> ()
    %31 = vector.shape_cast %30 : vector<2x8x32xf32> to vector<2x1x8x32xf32>
    %32 = tpu.transpose %31, [2, 0, 1, 3] : vector<2x1x8x32xf32> -> vector<8x2x1x32xf32>
    %33 = vector.shape_cast %32 : vector<8x2x1x32xf32> to vector<16x32xf32>
    %c0_10 = arith.constant 0 : index
    %c0_11 = arith.constant 0 : index
    %34 = vector.load %arg4[%c0_10, %c0_11] : memref<32x32xf32, #tpu.memory_space<vmem>>, vector<32x32xf32>
    %cst_12 = arith.constant dense<0.000000e+00> : vector<16x32xf32>
    %35 = tpu.matmul %33, %34, %cst_12 {dimension_numbers = #tpu.dot_dimension_numbers<[1], [0], [0], [1], [0, 0, 1, 1], [], []>} : vector<16x32xf32>, vector<32x32xf32>, vector<16x32xf32> -> vector<16x32xf32>
    %c0_13 = arith.constant 0 : index
    %c0_14 = arith.constant 0 : index
    %36 = vector.load %arg5[%c0_13, %c0_14] : memref<1x32xf32, #tpu.memory_space<vmem>>, vector<1x32xf32>
    %37 = vector.broadcast %36 : vector<1x32xf32> to vector<16x32xf32>
    %38 = arith.addf %35, %37 : vector<16x32xf32>
    %39 = arith.addf %1, %38 : vector<16x32xf32>
    %cst_15 = arith.constant dense<0.000000e+00> : vector<16xf32>
    %40 = vector.multi_reduction <add>, %39, %cst_15 [1] : vector<16x32xf32> to vector<16xf32>
    %41 = vector.shape_cast %40 : vector<16xf32> to vector<16x1xf32>
    %cst_16 = arith.constant 3.200000e+01 : f32
    %42 = vector.broadcast %cst_16 : f32 to vector<16x1xf32>
    %43 = arith.divf %41, %42 : vector<16x1xf32>
    %44 = arith.mulf %39, %39 : vector<16x32xf32>
    %cst_17 = arith.constant dense<0.000000e+00> : vector<16xf32>
    %45 = vector.multi_reduction <add>, %44, %cst_17 [1] : vector<16x32xf32> to vector<16xf32>
    %46 = vector.shape_cast %45 : vector<16xf32> to vector<16x1xf32>
    %cst_18 = arith.constant 3.200000e+01 : f32
    %47 = vector.broadcast %cst_18 : f32 to vector<16x1xf32>
    %48 = arith.divf %46, %47 : vector<16x1xf32>
    %49 = arith.mulf %43, %43 : vector<16x1xf32>
    %50 = arith.subf %48, %49 : vector<16x1xf32>
    %51 = vector.broadcast %43 : vector<16x1xf32> to vector<16x32xf32>
    %52 = arith.subf %39, %51 : vector<16x32xf32>
    %cst_19 = arith.constant 9.99999974E-6 : f32
    %53 = vector.broadcast %cst_19 : f32 to vector<16x1xf32>
    %54 = arith.addf %50, %53 : vector<16x1xf32>
    %55 = math.rsqrt %54 : vector<16x1xf32>
    %56 = vector.broadcast %55 : vector<16x1xf32> to vector<16x32xf32>
    %57 = arith.mulf %52, %56 : vector<16x32xf32>
    %c0_20 = arith.constant 0 : index
    %c0_21 = arith.constant 0 : index
    %58 = vector.load %arg6[%c0_20, %c0_21] : memref<1x32xf32, #tpu.memory_space<vmem>>, vector<1x32xf32>
    %59 = vector.broadcast %58 : vector<1x32xf32> to vector<16x32xf32>
    %60 = arith.mulf %57, %59 : vector<16x32xf32>
    %c0_22 = arith.constant 0 : index
    %c0_23 = arith.constant 0 : index
    %61 = vector.load %arg7[%c0_22, %c0_23] : memref<1x32xf32, #tpu.memory_space<vmem>>, vector<1x32xf32>
    %62 = vector.broadcast %61 : vector<1x32xf32> to vector<16x32xf32>
    %63 = arith.addf %60, %62 : vector<16x32xf32>
    %64 = vector.shape_cast %63 : vector<16x32xf32> to vector<8x2x32xf32>
    %c0_24 = arith.constant 0 : index
    %c0_25 = arith.constant 0 : index
    %c0_26 = arith.constant 0 : index
    %65 = vector.load %arg8[%c0_24, %c0_25, %c0_26] : memref<8x2x32xf32, #tpu.memory_space<vmem>>, vector<8x2x32xf32>
    tpu.vector_store %arg8[%c0_24, %c0_25, %c0_26], %64 {strides = array<i32>} : memref<8x2x32xf32, #tpu.memory_space<vmem>>, vector<8x2x32xf32>,
    return
  }
  func.func @transform_0(%arg0: i32) -> (i32, i32, i32) {
    %c0_i32 = arith.constant 0 : i32
    %c0_i32_0 = arith.constant 0 : i32
    %c0_i32_1 = arith.constant 0 : i32
    return %c0_i32, %arg0, %c0_i32_0 : i32, i32, i32
  }
  func.func @transform_1(%arg0: i32) -> (i32, i32) {
    %c0_i32 = arith.constant 0 : i32
    %c0_i32_0 = arith.constant 0 : i32
    %c0_i32_1 = arith.constant 0 : i32
    return %c0_i32, %c0_i32_0 : i32, i32
  }
  func.func @transform_2(%arg0: i32) -> (i32, i32) {
    %c0_i32 = arith.constant 0 : i32
    %c0_i32_0 = arith.constant 0 : i32
    %c0_i32_1 = arith.constant 0 : i32
    return %c0_i32, %c0_i32_0 : i32, i32
  }
  func.func @transform_3(%arg0: i32) -> (i32, i32) {
    %c0_i32 = arith.constant 0 : i32
    %c0_i32_0 = arith.constant 0 : i32
    %c0_i32_1 = arith.constant 0 : i32
    return %c0_i32, %c0_i32_0 : i32, i32
  }
  func.func @transform_4(%arg0: i32) -> (i32, i32) {
    %c0_i32 = arith.constant 0 : i32
    %c0_i32_0 = arith.constant 0 : i32
    %c0_i32_1 = arith.constant 0 : i32
    return %c0_i32, %c0_i32_0 : i32, i32
  }
  func.func @transform_5(%arg0: i32) -> (i32, i32) {
    %c0_i32 = arith.constant 0 : i32
    %c0_i32_0 = arith.constant 0 : i32
    %c0_i32_1 = arith.constant 0 : i32
    return %c0_i32, %c0_i32_0 : i32, i32
  }
  func.func @transform_6(%arg0: i32) -> (i32, i32) {
    %c0_i32 = arith.constant 0 : i32
    %c0_i32_0 = arith.constant 0 : i32
    %c0_i32_1 = arith.constant 0 : i32
    return %c0_i32, %c0_i32_0 : i32, i32
  }
  func.func @transform_7(%arg0: i32) -> (i32, i32, i32) {
    %c0_i32 = arith.constant 0 : i32
    %c0_i32_0 = arith.constant 0 : i32
    %c0_i32_1 = arith.constant 0 : i32
    return %c0_i32, %arg0, %c0_i32_0 : i32, i32, i32
  }
}

module attributes {stable_mosaic.version = 11 : i64} {
  func.func @_self_attn_kernel(%arg0: i32, %arg1: memref<8x2x32xf32, #tpu.memory_space<vmem>>, %arg2: memref<32x96xf32, #tpu.memory_space<vmem>>, %arg3: memref<1x96xf32, #tpu.memory_space<vmem>>, %arg4: memref<32x32xf32, #tpu.memory_space<vmem>>, %arg5: memref<1x32xf32, #tpu.memory_space<vmem>>, %arg6: memref<1x32xf32, #tpu.memory_space<vmem>>, %arg7: memref<1x32xf32, #tpu.memory_space<vmem>>, %arg8: memref<8x2x32xf32, #tpu.memory_space<vmem>>) attributes {dimension_semantics = [#tpu.dimension_semantics<parallel>], iteration_bounds = array<i64: 1>, scalar_prefetch = 0 : i64, scratch_operands = 0 : i64, tpu.core_type = #tpu.core_type<tc>, window_params = [{transform_indices = @transform_0, window_bounds = array<i64: 8, 2, 32>}, {pipeline_mode = #tpu.pipeline_mode<synchronous>, transform_indices = @transform_1, window_bounds = array<i64: 32, 96>}, {pipeline_mode = #tpu.pipeline_mode<synchronous>, transform_indices = @transform_2, window_bounds = array<i64: 1, 96>}, {pipeline_mode = #tpu.pipeline_mode<synchronous>, transform_indices = @transform_3, window_bounds = array<i64: 32, 32>}, {pipeline_mode = #tpu.pipeline_mode<synchronous>, transform_indices = @transform_4, window_bounds = array<i64: 1, 32>}, {pipeline_mode = #tpu.pipeline_mode<synchronous>, transform_indices = @transform_5, window_bounds = array<i64: 1, 32>}, {pipeline_mode = #tpu.pipeline_mode<synchronous>, transform_indices = @transform_6, window_bounds = array<i64: 1, 32>}, {transform_indices = @transform_7, window_bounds = array<i64: 8, 2, 32>}]} {
    %c0 = arith.constant 0 : index
    %c0_0 = arith.constant 0 : index
    %c0_1 = arith.constant 0 : index
    %0 = vector.load %arg1[%c0, %c0_0, %c0_1] : memref<8x2x32xf32, #tpu.memory_space<vmem>>, vector<8x2x32xf32>
    %1 = vector.shape_cast %0 : vector<8x2x32xf32> to vector<16x32xf32>
    %c0_2 = arith.constant 0 : index
    %c0_3 = arith.constant 0 : index
    %2 = vector.load %arg2[%c0_2, %c0_3] : memref<32x96xf32, #tpu.memory_space<vmem>>, vector<32x96xf32>
    %cst = arith.constant dense<0.000000e+00> : vector<16x96xf32>
    %3 = tpu.matmul %1, %2, %cst {dimension_numbers = #tpu.dot_dimension_numbers<[1], [0], [0], [1], [0, 0, 1, 1], [], []>} : vector<16x32xf32>, vector<32x96xf32>, vector<16x96xf32> -> vector<16x96xf32>
    %c0_4 = arith.constant 0 : index
    %c0_5 = arith.constant 0 : index
    %4 = vector.load %arg3[%c0_4, %c0_5] : memref<1x96xf32, #tpu.memory_space<vmem>>, vector<1x96xf32>
    %5 = vector.broadcast %4 : vector<1x96xf32> to vector<16x96xf32>
    %6 = arith.addf %3, %5 : vector<16x96xf32>
    %7 = vector.extract_strided_slice %6 {offsets = [0, 0], sizes = [16, 32], strides = [1, 1]} : vector<16x96xf32> to vector<16x32xf32>
    %8 = vector.extract_strided_slice %6 {offsets = [0, 32], sizes = [16, 32], strides = [1, 1]} : vector<16x96xf32> to vector<16x32xf32>
    %9 = vector.extract_strided_slice %6 {offsets = [0, 64], sizes = [16, 32], strides = [1, 1]} : vector<16x96xf32> to vector<16x32xf32>
    %10 = vector.shape_cast %7 : vector<16x32xf32> to vector<8x2x1x32xf32>
    %11 = vector.shape_cast %10 : vector<8x2x1x32xf32> to vector<8x2x32xf32>
    %12 = vector.extract_strided_slice %11 {offsets = [0, 0, 0], sizes = [8, 1, 32], strides = [1, 1, 1]} : vector<8x2x32xf32> to vector<8x1x32xf32>
    %13 = vector.shape_cast %12 : vector<8x1x32xf32> to vector<8x32xf32>
    %14 = vector.extract_strided_slice %11 {offsets = [0, 1, 0], sizes = [8, 1, 32], strides = [1, 1, 1]} : vector<8x2x32xf32> to vector<8x1x32xf32>
    %15 = vector.shape_cast %14 : vector<8x1x32xf32> to vector<8x32xf32>
    %16 = vector.shape_cast %13 : vector<8x32xf32> to vector<1x8x32xf32>
    %17 = vector.shape_cast %15 : vector<8x32xf32> to vector<1x8x32xf32>
    %18 = tpu.concatenate %16, %17 in 0 : vector<1x8x32xf32>, vector<1x8x32xf32> -> vector<2x8x32xf32>
    %19 = vector.shape_cast %18 : vector<2x8x32xf32> to vector<2x1x8x32xf32>
    %20 = vector.shape_cast %19 : vector<2x1x8x32xf32> to vector<2x8x32xf32>
    %21 = vector.shape_cast %8 : vector<16x32xf32> to vector<8x2x1x32xf32>
    %22 = vector.shape_cast %21 : vector<8x2x1x32xf32> to vector<8x2x32xf32>
    %23 = vector.extract_strided_slice %22 {offsets = [0, 0, 0], sizes = [8, 1, 32], strides = [1, 1, 1]} : vector<8x2x32xf32> to vector<8x1x32xf32>
    %24 = vector.shape_cast %23 : vector<8x1x32xf32> to vector<8x32xf32>
    %25 = vector.extract_strided_slice %22 {offsets = [0, 1, 0], sizes = [8, 1, 32], strides = [1, 1, 1]} : vector<8x2x32xf32> to vector<8x1x32xf32>
    %26 = vector.shape_cast %25 : vector<8x1x32xf32> to vector<8x32xf32>
    %27 = vector.shape_cast %24 : vector<8x32xf32> to vector<1x8x32xf32>
    %28 = vector.shape_cast %26 : vector<8x32xf32> to vector<1x8x32xf32>
    %29 = tpu.concatenate %27, %28 in 0 : vector<1x8x32xf32>, vector<1x8x32xf32> -> vector<2x8x32xf32>
    %30 = vector.shape_cast %29 : vector<2x8x32xf32> to vector<2x1x8x32xf32>
    %31 = vector.shape_cast %30 : vector<2x1x8x32xf32> to vector<2x8x32xf32>
    %32 = vector.shape_cast %9 : vector<16x32xf32> to vector<8x2x1x32xf32>
    %33 = vector.shape_cast %32 : vector<8x2x1x32xf32> to vector<8x2x32xf32>
    %34 = vector.extract_strided_slice %33 {offsets = [0, 0, 0], sizes = [8, 1, 32], strides = [1, 1, 1]} : vector<8x2x32xf32> to vector<8x1x32xf32>
    %35 = vector.shape_cast %34 : vector<8x1x32xf32> to vector<8x32xf32>
    %36 = vector.extract_strided_slice %33 {offsets = [0, 1, 0], sizes = [8, 1, 32], strides = [1, 1, 1]} : vector<8x2x32xf32> to vector<8x1x32xf32>
    %37 = vector.shape_cast %36 : vector<8x1x32xf32> to vector<8x32xf32>
    %38 = vector.shape_cast %35 : vector<8x32xf32> to vector<1x8x32xf32>
    %39 = vector.shape_cast %37 : vector<8x32xf32> to vector<1x8x32xf32>
    %40 = tpu.concatenate %38, %39 in 0 : vector<1x8x32xf32>, vector<1x8x32xf32> -> vector<2x8x32xf32>
    %41 = vector.shape_cast %40 : vector<2x8x32xf32> to vector<2x1x8x32xf32>
    %42 = vector.shape_cast %41 : vector<2x1x8x32xf32> to vector<2x8x32xf32>
    "tpu.trace_start"() <{level = 10 : i32, message = "bld,bmd->blm"}> : () -> ()
    %cst_6 = arith.constant dense<0.000000e+00> : vector<2x8x8xf32>
    %43 = tpu.matmul %20, %31, %cst_6 {dimension_numbers = #tpu.dot_dimension_numbers<[2], [2], [1], [1], [0, 0, 0, 1, 1, 1], [0], [0]>} : vector<2x8x32xf32>, vector<2x8x32xf32>, vector<2x8x8xf32> -> vector<2x8x8xf32>
    "tpu.trace_stop"() : () -> ()
    %cst_7 = arith.constant dense<0xFF800000> : vector<2x8xf32>
    %44 = vector.multi_reduction <maximumf>, %43, %cst_7 [2] : vector<2x8x8xf32> to vector<2x8xf32>
    %45 = vector.shape_cast %44 : vector<2x8xf32> to vector<2x8x1xf32>
    %46 = vector.broadcast %45 : vector<2x8x1xf32> to vector<2x8x8xf32>
    %47 = arith.subf %43, %46 : vector<2x8x8xf32>
    %48 = math.exp %47 : vector<2x8x8xf32>
    %cst_8 = arith.constant dense<0.000000e+00> : vector<2x8xf32>
    %49 = vector.multi_reduction <add>, %48, %cst_8 [2] : vector<2x8x8xf32> to vector<2x8xf32>
    %50 = vector.shape_cast %49 : vector<2x8xf32> to vector<2x8x1xf32>
    %51 = tpu.reciprocal %50 {approx = true} : vector<2x8x1xf32> -> vector<2x8x1xf32>
    %52 = vector.broadcast %51 : vector<2x8x1xf32> to vector<2x8x8xf32>
    %53 = arith.mulf %48, %52 : vector<2x8x8xf32>
    "tpu.trace_start"() <{level = 10 : i32, message = "blm,bmd->bld"}> : () -> ()
    %cst_9 = arith.constant dense<0.000000e+00> : vector<2x8x32xf32>
    %54 = tpu.matmul %53, %42, %cst_9 {dimension_numbers = #tpu.dot_dimension_numbers<[2], [1], [1], [2], [0, 0, 0, 1, 1, 2], [0], [0]>} : vector<2x8x8xf32>, vector<2x8x32xf32>, vector<2x8x32xf32> -> vector<2x8x32xf32>
    "tpu.trace_stop"() : () -> ()
    %55 = vector.shape_cast %54 : vector<2x8x32xf32> to vector<2x1x8x32xf32>
    %56 = vector.shape_cast %55 : vector<2x1x8x32xf32> to vector<2x8x32xf32>
    %57 = vector.extract_strided_slice %56 {offsets = [0, 0, 0], sizes = [1, 8, 32], strides = [1, 1, 1]} : vector<2x8x32xf32> to vector<1x8x32xf32>
    %58 = vector.shape_cast %57 : vector<1x8x32xf32> to vector<8x32xf32>
    %59 = vector.extract_strided_slice %56 {offsets = [1, 0, 0], sizes = [1, 8, 32], strides = [1, 1, 1]} : vector<2x8x32xf32> to vector<1x8x32xf32>
    %60 = vector.shape_cast %59 : vector<1x8x32xf32> to vector<8x32xf32>
    %61 = vector.shape_cast %58 : vector<8x32xf32> to vector<8x1x32xf32>
    %62 = vector.shape_cast %60 : vector<8x32xf32> to vector<8x1x32xf32>
    %63 = tpu.concatenate %61, %62 in 1 : vector<8x1x32xf32>, vector<8x1x32xf32> -> vector<8x2x32xf32>
    %64 = vector.shape_cast %63 : vector<8x2x32xf32> to vector<16x32xf32>
    %c0_10 = arith.constant 0 : index
    %c0_11 = arith.constant 0 : index
    %65 = vector.load %arg4[%c0_10, %c0_11] : memref<32x32xf32, #tpu.memory_space<vmem>>, vector<32x32xf32>
    %cst_12 = arith.constant dense<0.000000e+00> : vector<16x32xf32>
    %66 = tpu.matmul %64, %65, %cst_12 {dimension_numbers = #tpu.dot_dimension_numbers<[1], [0], [0], [1], [0, 0, 1, 1], [], []>} : vector<16x32xf32>, vector<32x32xf32>, vector<16x32xf32> -> vector<16x32xf32>
    %c0_13 = arith.constant 0 : index
    %c0_14 = arith.constant 0 : index
    %67 = vector.load %arg5[%c0_13, %c0_14] : memref<1x32xf32, #tpu.memory_space<vmem>>, vector<1x32xf32>
    %68 = vector.broadcast %67 : vector<1x32xf32> to vector<16x32xf32>
    %69 = arith.addf %66, %68 : vector<16x32xf32>
    %70 = arith.addf %1, %69 : vector<16x32xf32>
    %cst_15 = arith.constant dense<0.000000e+00> : vector<16xf32>
    %71 = vector.multi_reduction <add>, %70, %cst_15 [1] : vector<16x32xf32> to vector<16xf32>
    %72 = vector.shape_cast %71 : vector<16xf32> to vector<16x1xf32>
    %cst_16 = arith.constant 3.200000e+01 : f32
    %73 = vector.broadcast %cst_16 : f32 to vector<16x1xf32>
    %74 = arith.divf %72, %73 : vector<16x1xf32>
    %75 = arith.mulf %70, %70 : vector<16x32xf32>
    %cst_17 = arith.constant dense<0.000000e+00> : vector<16xf32>
    %76 = vector.multi_reduction <add>, %75, %cst_17 [1] : vector<16x32xf32> to vector<16xf32>
    %77 = vector.shape_cast %76 : vector<16xf32> to vector<16x1xf32>
    %cst_18 = arith.constant 3.200000e+01 : f32
    %78 = vector.broadcast %cst_18 : f32 to vector<16x1xf32>
    %79 = arith.divf %77, %78 : vector<16x1xf32>
    %80 = arith.mulf %74, %74 : vector<16x1xf32>
    %81 = arith.subf %79, %80 : vector<16x1xf32>
    %82 = vector.broadcast %74 : vector<16x1xf32> to vector<16x32xf32>
    %83 = arith.subf %70, %82 : vector<16x32xf32>
    %cst_19 = arith.constant 9.99999974E-6 : f32
    %84 = vector.broadcast %cst_19 : f32 to vector<16x1xf32>
    %85 = arith.addf %81, %84 : vector<16x1xf32>
    %86 = math.rsqrt %85 : vector<16x1xf32>
    %87 = vector.broadcast %86 : vector<16x1xf32> to vector<16x32xf32>
    %88 = arith.mulf %83, %87 : vector<16x32xf32>
    %c0_20 = arith.constant 0 : index
    %c0_21 = arith.constant 0 : index
    %89 = vector.load %arg6[%c0_20, %c0_21] : memref<1x32xf32, #tpu.memory_space<vmem>>, vector<1x32xf32>
    %90 = vector.broadcast %89 : vector<1x32xf32> to vector<16x32xf32>
    %91 = arith.mulf %88, %90 : vector<16x32xf32>
    %c0_22 = arith.constant 0 : index
    %c0_23 = arith.constant 0 : index
    %92 = vector.load %arg7[%c0_22, %c0_23] : memref<1x32xf32, #tpu.memory_space<vmem>>, vector<1x32xf32>
    %93 = vector.broadcast %92 : vector<1x32xf32> to vector<16x32xf32>
    %94 = arith.addf %91, %93 : vector<16x32xf32>
    %95 = vector.shape_cast %94 : vector<16x32xf32> to vector<8x2x32xf32>
    %c0_24 = arith.constant 0 : index
    %c0_25 = arith.constant 0 : index
    %c0_26 = arith.constant 0 : index
    %96 = vector.load %arg8[%c0_24, %c0_25, %c0_26] : memref<8x2x32xf32, #tpu.memory_space<vmem>>, vector<8x2x32xf32>
    tpu.vector_store %arg8[%c0_24, %c0_25, %c0_26], %95 {strides = array<i32>} : memref<8x2x32xf32, #tpu.memory_space<vmem>>, vector<8x2x32xf32>,
    return
  }
  func.func @transform_0(%arg0: i32) -> (i32, i32, i32) {
    %c0_i32 = arith.constant 0 : i32
    %c0_i32_0 = arith.constant 0 : i32
    %c0_i32_1 = arith.constant 0 : i32
    return %c0_i32, %arg0, %c0_i32_0 : i32, i32, i32
  }
  func.func @transform_1(%arg0: i32) -> (i32, i32) {
    %c0_i32 = arith.constant 0 : i32
    %c0_i32_0 = arith.constant 0 : i32
    %c0_i32_1 = arith.constant 0 : i32
    return %c0_i32, %c0_i32_0 : i32, i32
  }
  func.func @transform_2(%arg0: i32) -> (i32, i32) {
    %c0_i32 = arith.constant 0 : i32
    %c0_i32_0 = arith.constant 0 : i32
    %c0_i32_1 = arith.constant 0 : i32
    return %c0_i32, %c0_i32_0 : i32, i32
  }
  func.func @transform_3(%arg0: i32) -> (i32, i32) {
    %c0_i32 = arith.constant 0 : i32
    %c0_i32_0 = arith.constant 0 : i32
    %c0_i32_1 = arith.constant 0 : i32
    return %c0_i32, %c0_i32_0 : i32, i32
  }
  func.func @transform_4(%arg0: i32) -> (i32, i32) {
    %c0_i32 = arith.constant 0 : i32
    %c0_i32_0 = arith.constant 0 : i32
    %c0_i32_1 = arith.constant 0 : i32
    return %c0_i32, %c0_i32_0 : i32, i32
  }
  func.func @transform_5(%arg0: i32) -> (i32, i32) {
    %c0_i32 = arith.constant 0 : i32
    %c0_i32_0 = arith.constant 0 : i32
    %c0_i32_1 = arith.constant 0 : i32
    return %c0_i32, %c0_i32_0 : i32, i32
  }
  func.func @transform_6(%arg0: i32) -> (i32, i32) {
    %c0_i32 = arith.constant 0 : i32
    %c0_i32_0 = arith.constant 0 : i32
    %c0_i32_1 = arith.constant 0 : i32
    return %c0_i32, %c0_i32_0 : i32, i32
  }
  func.func @transform_7(%arg0: i32) -> (i32, i32, i32) {
    %c0_i32 = arith.constant 0 : i32
    %c0_i32_0 = arith.constant 0 : i32
    %c0_i32_1 = arith.constant 0 : i32
    return %c0_i32, %arg0, %c0_i32_0 : i32, i32, i32
  }
}

</mosaic_0001>

<bundles_post_ra>
// kernel: tpu_custom_call.1
= control target key start
LH: loop header
LB: loop body
LE: loop exit
PB: predicated region body
PF: predicated region fallthrough
CT: control target
= control target key end

     0   :  { %12 = vsyncpa [#allocation3], 0  ;;  %s2292_s0 = inlined_call_operand.hbm [shape: f32[8,2,32], index: 0, kind: input, shape index: {}]   ;;  %s2293_s1 = inlined_call_operand.hbm [shape: f32[32,96], index: 1, kind: input, shape index: {}]   ;;  %s2294_s2 = inlined_call_operand.vmem [shape: f32[1,96], index: 2, kind: input, shape index: {}]   ;;  %s2295_s3 = inlined_call_operand.hbm [shape: f32[32,32], index: 3, kind: input, shape index: {}]   ;;  %s2296_s4 = inlined_call_operand.vmem [shape: f32[1,32], index: 4, kind: input, shape index: {}]   ;;  %s2297_s5 = inlined_call_operand.vmem [shape: f32[1,32], index: 5, kind: input, shape index: {}]   ;;  %s2298_s6 = inlined_call_operand.vmem [shape: f32[1,32], index: 6, kind: input, shape index: {}]   ;;  %s2299_s7 = inlined_call_operand.hbm [shape: f32[8,2,32], index: 7, kind: output, shape index: {}]  }
   0x1   :  { %13 = vsyncpa [#allocation6], 0 }
   0x2   :  { %14 = vsyncpa [#allocation4], 0  ;;  %s1836_s24 = smov [#allocation5]  }
   0x3   :  { %s32_s25 = sshll.u32 %s1836_s24, 4  ;;  %s33_s25 = int_to_ptr.vmem [resolvable:$true] %s32_s25 }
   0x4   :  { %s1758_s26 = scalar_lea.vmem %s33_s25, 512  ;;  %p1763_p1 = scmp.lt.s32.totalorder %s33_s25, %s33_s25 }
   0x5   :  { %p1759_p0 = scmp.ne.s32.totalorder %s33_s25, %s1758_s26  ;;  %p1764_p2 = scmp.lt.s32.totalorder %s1758_s26, %s1758_s26 }
   0x7   :  { %p1765_p3 = por %p1764_p2, %p1763_p1 }
   0x9   :  { %p1766_p4 = pnand %p1765_p3, %p1759_p0 }
   0xb   :  { %1769 = shalt.err (!%p1766_p4)
}
   0xc   :  { %s1837_s27 = smov 128   ;;  %s1838_s28 = smov 8  }
   0xd   :  { %38 = dma.hbm_to_vmem [thread:$0]  %s2293_s1, 512, %s33_s25, [#allocation6], %s1837_s27, %s1837_s27, %s1838_s28  }
   0xe   :  { %s1839_s8 = smov [#allocation2]  }
   0xf   :  { %s20_s9 = sshll.u32 %s1839_s8, 4  ;;  %s21_s9 = int_to_ptr.vmem [resolvable:$true] %s20_s9 }
  0x10   :  { %s1778_s10 = scalar_lea.vmem %s21_s9, 256  ;;  %p1783_p6 = scmp.lt.s32.totalorder %s21_s9, %s21_s9 }
  0x11   :  { %p1779_p5 = scmp.ne.s32.totalorder %s21_s9, %s1778_s10  ;;  %p1784_p7 = scmp.lt.s32.totalorder %s1778_s10, %s1778_s10 }
  0x13   :  { %p1785_p8 = por %p1784_p7, %p1783_p6 }
  0x15   :  { %p1786_p9 = pnand %p1785_p8, %p1779_p5 }
  0x17   :  { %1789 = shalt.err (!%p1786_p9)
}
  0x18   :  { %s1840_s11 = smov 32   ;;  %s1841_s12 = smov 2  }
  0x19   :  { %26 = dma.hbm_to_vmem [thread:$0]  %s2292_s0, 256, %s21_s9, [#allocation3], %s1840_s11, %s1840_s11, %s1841_s12  }
  0x1a   :  { %s1842_s1 = smov [#allocation7]  }
  0x1b   :  { %s46_s15 = sshll.u32 %s1842_s1, 4  ;;  %s47_s15 = int_to_ptr.vmem [resolvable:$true] %s46_s15 }
  0x1c   :  { %s1798_s16 = scalar_lea.vmem %s47_s15, 512  ;;  %p1803_p11 = scmp.lt.s32.totalorder %s47_s15, %s47_s15 }
  0x1d   :  { %p1799_p10 = scmp.ne.s32.totalorder %s47_s15, %s1798_s16  ;;  %p1804_p12 = scmp.lt.s32.totalorder %s1798_s16, %s1798_s16 }
  0x1f   :  { %p1805_p13 = por %p1804_p12, %p1803_p11 }
  0x21   :  { %p1806_p0 = pnand %p1805_p13, %p1799_p10 }
  0x23   :  { %1809 = shalt.err (!%p1806_p0)
}
  0x24   :  { %52 = dma.hbm_to_vmem [thread:$0]  %s2295_s3, 512, %s47_s15, [#allocation6], %s1837_s27, %s1837_s27, %s1838_s28  }
  0x25   :  { %1830 = dma.done.wait [#allocation3], 256  }
  0x26   :  { %1831 = vsyncadd [#allocation3], 4294967040 }
  0x27   :  { %1832 = dma.done.wait [#allocation6], 1024  }
  0x28   :  { %1833 = vsyncadd [#allocation6], 4294966272  ;;  %v100_v0 = vlaneseq  ;;  %v1843_v1 = vmov 1983009808   ;;  %v79_v5 = vld [vmem:[#allocation5 + $0x18] sm:$0xff]  ;;  %v78_v6 = vld [vmem:[#allocation5 + $0x10] sm:$0xff] }
  0x29   :  { %v98_v2 = vunpack.c.l.s4 %v1843_v1  ;;  %1677 = vmatprep.subr.mxu0 %v79_v5  ;;  %v77_v8 = vld [vmem:[#allocation5 + $0x8] sm:$0xff]  ;;  %v1912_v9 = vld [vmem:[#allocation2] sm:$0x3]  ;;  %v1914_v10 = vld [vmem:[#allocation2 + $0x2] sm:$0x3]  ;;  %vm129_vm0 = vcmask 261120  }
  0x2a   :  { %v1907_v4 = vshrl.u32 %v100_v0, 7  ;;  %1678 = vmatpush3.msra.mxu0 %v79_v5  ;;  %v1916_v11 = vld [vmem:[#allocation2 + $0x4] sm:$0x3]  ;;  %v1918_v12 = vld [vmem:[#allocation2 + $0x6] sm:$0x3]  ;;  %v95_v13 = vcombine.low %v1912_v9, %v1914_v10  ;;  %v76_v19 = vld [vmem:[#allocation5] sm:$0xff] }
  0x2b   :  { %v99_v3 = vunpack.c.0.s8 %v98_v2  ;;  %v1922_v14 = vld [vmem:[#allocation2 + $0x8] sm:$0x3]  ;;  %1679 = vmatprep.subr.mxu0 %v78_v6  ;;  %v96_v15 = vcombine.low %v1916_v11, %v1918_v12  ;;  %v1926_v16 = vld [vmem:[#allocation2 + $0xa] sm:$0x3]  ;;  %v1928_v17 = vld [vmem:[#allocation2 + $0xc] sm:$0x3] }
  0x2c   :  { %v1930_v18 = vld [vmem:[#allocation2 + $0xe] sm:$0x3]  ;;  %1680 = vmatpush3.msra.mxu0 %v78_v6  ;;  %v112_v21 = vcombine.low %v1922_v14, %v1926_v16  ;;  %v1844_v28 = vmov 1966171168   ;;  %v1643_v31 = vld [vmem:[%s2294_s2] ss:$0 sm:$0xff] }
  0x2d   :  { %v1910_v7 = vsub.s32 %v99_v3, %v1907_v4  ;;  %v113_v22 = vcombine.low %v1928_v17, %v1930_v18  ;;  %1681 = vmatprep.subr.mxu0 %v77_v8  ;;  %v213_v29 = vunpack.c.l.s4 %v1844_v28  ;;  %s1845_s19 = smov 96   ;;  %v1846_v54 = vmov 0.0   ;;  %s1848_s2 = smov 64  }
  0x2e   :  { %1682 = vmatpush3.msra.mxu0 %v77_v8  ;;  %1688 = vmatprep.subr.mxu1 %v1846_v54  ;;  %vm1847_vm1 = vmmov 0   ;;  %vm717_vm2 = vcmask 64512   ;;  %vm1112_vm3 = vcmask 1041409   ;;  %vm1115_vm4 = vcmask 1042434  }
  0x2f   :  { %v103_v20 = vrot.slane %v95_v13, %v1910_v7  ;;  %v110_v23 = vrot.slane %v96_v15, %v1910_v7  ;;  %v120_v24 = vrot.slane %v112_v21, %v1910_v7  ;;  %v127_v25 = vrot.slane %v113_v22, %v1910_v7  ;;  %1683 = vmatprep.subr.mxu0 %v76_v19 }
  0x30   :  { %1684 = vmatpush3.msra.mxu0 %v76_v19  ;;  %v214_v30 = vunpack.c.0.s8 %v213_v29  ;;  %1690 = vmatprep.mubr.msk.f32.mxu1 %vm1847_vm1, %v1846_v54  ;;  %vm1118_vm5 = vcmask 1043459   ;;  %vm1121_vm6 = vcmask 1044484   ;;  %vm1124_vm7 = vcmask 1045509  }
  0x31   :  { %v111_v26 = vcombine.low %v103_v20, %v110_v23  ;;  %v128_v27 = vcombine.low %v120_v24, %v127_v25  ;;  %vm1127_vm8 = vcmask 1046534   ;;  %vm1130_vm9 = vcmask 1047559  }
  0x32   :  { %v1946_v32 = vsub.s32 %v214_v30, %v1907_v4  ;;  %vm1616_vm10 = vcmask 254976  }
  0x33   :  { %1685 = vmatprep.mubr.msk.f32.mxu0 %vm129_vm0, %v111_v26 }
  0x34   :  { %1686 = vmatmul.mubr.msk.f32.vlgmr.msra.gmra.mxu0 %vm129_vm0, %v128_v27 }
  0xf4   :  { %v1687_v33 = vpop.f32.mrf.mxu0 }
  0xf5   :  { %v206_v34 = vadd.f32 %v1687_v33, %v1643_v31 }
  0xf6   :  { %v200_v35 = vpop.f32.mrf.mxu0 }
  0xf7   :  { %v267_v36 = vrot.slane %v206_v34, %v1946_v32  ;;  %v201_v37 = vadd.f32 %v1643_v31, %v200_v35  ;;  %v260_v38 = vcombine.high %v206_v34, %v206_v34 }
  0xf9   :  { %v1950_v39 = vrot.slane %v267_v36, %v1946_v32  ;;  %v211_v40 = vcombine.high %v201_v37, %v201_v37  ;;  %v218_v41 = vrot.slane %v201_v37, %v1946_v32  ;;  %v274_v42 = vrot.slane %v260_v38, %v1946_v32 }
  0xfa   :  { %v275_v46 = vcombine.high %v267_v36, %v267_v36 }
  0xfb   :  { %317 = vrot.lane.b32.xlu0 %v1950_v39, %s1845_s19  ;;  %v225_v43 = vrot.slane %v211_v40, %v1946_v32  ;;  %v1959_v44 = vcombine.high %v1950_v39, %v1950_v39  ;;  %v1962_v45 = vrot.slane %v218_v41, %v1946_v32  ;;  %v1969_v47 = vrot.slane %v274_v42, %v1946_v32 }
  0xfc   :  { %v1979_v49 = vrot.slane %v275_v46, %v1946_v32  ;;  %v226_v51 = vcombine.high %v218_v41, %v218_v41  ;;  %v276_v58 = vcombine.high %v274_v42, %v274_v42 }
  0xfd   :  { %319 = vrot.lane.b32.xlu1 %v1959_v44, %s1845_s19  ;;  %v1972_v48 = vrot.slane %v225_v43, %v1946_v32  ;;  %v1983_v50 = vcombine.high %v1969_v47, %v1969_v47  ;;  %v1995_v53 = vcombine.high %v1962_v45, %v1962_v45  ;;  %v227_v55 = vcombine.high %v225_v43, %v225_v43 }
  0xfe   :  { %v1991_v52 = vcombine.high %v1979_v49, %v1979_v49  ;;  %v2003_v56 = vrot.slane %v226_v51, %v1946_v32  ;;  %v2031_v62 = vrot.slane %v276_v58, %v1946_v32  ;;  %v375_v26 = vcombine.low %v1950_v39, %v1959_v44 }
  0xff   :  { %309 = vrot.lane.b32.xlu0 %v1962_v45, %s1845_s19  ;;  %v2007_v57 = vcombine.high %v1972_v48, %v1972_v48  ;;  %v2020_v60 = vrot.slane %v227_v55, %v1946_v32  ;;  %v376_v22 = vcombine.low %v1969_v47, %v1983_v50  ;;  %v373_v23 = vcombine.low %v1962_v45, %v1995_v53 }
 0x100   :  { %v2017_v59 = vcombine.high %v2003_v56, %v2003_v56  ;;  %v2039_v63 = vcombine.high %v2031_v62, %v2031_v62  ;;  %v397_v38 = vrot.slane %v375_v26, %v1946_v32 }
 0x101   :  { %313 = vrot.lane.b32.xlu1 %v1972_v48, %s1845_s19  ;;  %v2028_v61 = vcombine.high %v2020_v60, %v2020_v60  ;;  %v374_v15 = vcombine.low %v1972_v48, %v2007_v57  ;;  %v404_v33 = vrot.slane %v376_v22, %v1946_v32  ;;  %v383_v34 = vrot.slane %v373_v23, %v1946_v32 }
 0x102   :  { %v547_v22 = vcombine.low %v1979_v49, %v1991_v52 }
 0x103   :  { %321 = vrot.lane.b32.xlu0 %v1969_v47, %s1845_s19  ;;  %v390_v27 = vrot.slane %v374_v15, %v1946_v32  ;;  %v406_v46 = vcombine.low %v397_v38, %v404_v33  ;;  %v546_v58 = vcombine.low %v2020_v60, %v2028_v61 }
 0x104   :  { %v569_v33 = vrot.slane %v547_v22, %v1946_v32 }
 0x105   :  { %323 = vrot.lane.b32.xlu1 %v1983_v50, %s1845_s19  ;;  %v405_v41 = vcombine.low %v383_v34, %v390_v27  ;;  %v420_v15 = vrot.slane %v406_v46, %v1946_v32  ;;  %v562_v23 = vrot.slane %v546_v58, %v1946_v32 }
 0x107   :  { %333 = vrot.lane.b32.xlu0 %v1979_v49, %s1845_s19 }
 0x109   :  { %335 = vrot.lane.b32.xlu1 %v1991_v52, %s1845_s19 }
 0x10b   :  { %311 = vrot.lane.b32.xlu0 %v1995_v53, %s1845_s19 }
 0x10d   :  { %315 = vrot.lane.b32.xlu1 %v2007_v57, %s1845_s19 }
 0x10f   :  { %325 = vrot.lane.b32.xlu0 %v2003_v56, %s1845_s19 }
 0x111   :  { %327 = vrot.lane.b32.xlu1 %v2017_v59, %s1845_s19 }
 0x113   :  { %329 = vrot.lane.b32.xlu0 %v2020_v60, %s1845_s19 }
 0x115   :  { %331 = vrot.lane.b32.xlu1 %v2028_v61, %s1845_s19 }
 0x117   :  { %337 = vrot.lane.b32.xlu0 %v2031_v62, %s1845_s19 }
 0x119   :  { %339 = vrot.lane.b32.xlu1 %v2039_v63, %s1845_s19 }
 0x16d   :  { %v318_v0 = vpop.permute.xlu0 %317 }
 0x16f   :  { %v320_v1 = vpop.permute.xlu1 %319 }
 0x170   :  { %v424_v20 = vcombine.low %v318_v0, %v320_v1  ;;  %v413_v1 = vrot.slane %v405_v41, %v1946_v32 }
 0x171   :  { %v310_v2 = vpop.permute.xlu0 %309 }
 0x172   :  { %v446_v29 = vrot.slane %v424_v20, %v1946_v32  ;;  %v421_v26 = vcombine.low %v413_v1, %v420_v15 }
 0x173   :  { %v314_v3 = vpop.permute.xlu1 %313 }
 0x175   :  { %v322_v5 = vpop.permute.xlu0 %321 }
 0x177   :  { %v324_v6 = vpop.permute.xlu1 %323 }
 0x178   :  { %v425_v13 = vcombine.low %v322_v5, %v324_v6  ;;  %v545_v6 = vcombine.low %v2003_v56, %v2017_v59 }
 0x179   :  { %v334_v8 = vpop.permute.xlu0 %333 }
 0x17a   :  { %v453_v24 = vrot.slane %v425_v13, %v1946_v32  ;;  %v548_v13 = vcombine.low %v2031_v62, %v2039_v63 }
 0x17b   :  { %v336_v19 = vpop.permute.xlu1 %335 }
 0x17c   :  { %v455_v35 = vcombine.low %v446_v29, %v453_v24  ;;  %v596_v20 = vcombine.low %v334_v8, %v336_v19  ;;  %v555_v29 = vrot.slane %v545_v6, %v1946_v32  ;;  %v576_v8 = vrot.slane %v548_v13, %v1946_v32 }
 0x17d   :  { %v312_v21 = vpop.permute.xlu0 %311 }
 0x17e   :  { %v422_v25 = vcombine.low %v310_v2, %v312_v21  ;;  %v469_v55 = vrot.slane %v455_v35, %v1946_v32  ;;  %v618_v19 = vrot.slane %v596_v20, %v1946_v32  ;;  %v577_v34 = vcombine.low %v555_v29, %v562_v23 }
 0x17f   :  { %v316_v28 = vpop.permute.xlu1 %315 }
 0x180   :  { %v423_v30 = vcombine.low %v314_v3, %v316_v28  ;;  %v432_v36 = vrot.slane %v422_v25, %v1946_v32 }
 0x181   :  { %v326_v31 = vpop.permute.xlu0 %325 }
 0x182   :  { %v439_v37 = vrot.slane %v423_v30, %v1946_v32 }
 0x183   :  { %v328_v40 = vpop.permute.xlu1 %327 }
 0x184   :  { %v454_v42 = vcombine.low %v432_v36, %v439_v37  ;;  %v594_v2 = vcombine.low %v326_v31, %v328_v40  ;;  %v578_v36 = vcombine.low %v569_v33, %v576_v8  ;;  %v585_v40 = vrot.slane %v577_v34, %v1946_v32 }
 0x185   :  { %v330_v43 = vpop.permute.xlu0 %329 }
 0x186   :  { %v462_v51 = vrot.slane %v454_v42, %v1946_v32  ;;  %v604_v27 = vrot.slane %v594_v2, %v1946_v32  ;;  %v592_v42 = vrot.slane %v578_v36, %v1946_v32 }
 0x187   :  { %v332_v0 = vpop.permute.xlu1 %331 }
 0x188   :  { %v595_v3 = vcombine.low %v330_v43, %v332_v0  ;;  %v470_v5 = vcombine.low %v462_v51, %v469_v55  ;;  %v593_v43 = vcombine.low %v585_v40, %v592_v42 }
 0x189   :  { %v338_v24 = vpop.permute.xlu0 %337 }
 0x18a   :  { %v611_v21 = vrot.slane %v595_v3, %v1946_v32  ;;  %1689 = vmatpush3.xpose.msk.msra.mxu1 %vm129_vm0, %v470_v5 }
 0x18b   :  { %v340_v25 = vpop.permute.xlu1 %339  ;;  %1693 = vmatprep.subr.mxu1 %v1846_v54 }
 0x18c   :  { %v597_v28 = vcombine.low %v338_v24, %v340_v25  ;;  %v626_v30 = vcombine.low %v604_v27, %v611_v21 }
 0x18d   :  { %1691 = vmatmul.mubr.msk.f32.vlgmr.msra.gmra.mxu1 %vm129_vm0, %v421_v26 }
 0x18e   :  { %v625_v31 = vrot.slane %v597_v28, %v1946_v32  ;;  %1695 = vmatprep.mubr.msk.f32.mxu1 %vm1847_vm1, %v1846_v54  ;;  %v634_v37 = vrot.slane %v626_v30, %v1946_v32 }
 0x190   :  { %v627_v35 = vcombine.low %v618_v19, %v625_v31 }
 0x192   :  { %v641_v38 = vrot.slane %v627_v35, %v1946_v32 }
 0x194   :  { %v642_v41 = vcombine.low %v634_v37, %v641_v38 }
 0x196   :  { %1694 = vmatpush3.xpose.msk.msra.mxu1 %vm129_vm0, %v642_v41 }
 0x197   :  { %1698 = vmatprep.subr.mxu1 %v1846_v54 }
 0x199   :  { %1696 = vmatmul.mubr.msk.f32.vlgmr.msra.gmra.mxu1 %vm129_vm0, %v593_v43 }
 0x19a   :  { %1700 = vmatprep.mubr.msk.f32.mxu1 %vm1847_vm1, %v1846_v54 }
 0x24d   :  { %v541_v46 = vpop.f32.mrf.mxu1 }
 0x24e   :  { %v718_v51 = vsel %vm717_vm2, %v541_v46, -inf }
 0x24f   :  { %v1692_v55 = vpop.f32.mrf.mxu1  ;;  %719 = vmax.xlane.f32.xlu0 %v718_v51 }
 0x259   :  { %v713_v58 = vpop.f32.mrf.mxu1 }
 0x25a   :  { %v721_v0 = vsel %vm717_vm2, %v713_v58, -inf }
 0x25b   :  { %722 = vmax.xlane.f32.xlu1 %v721_v0  ;;  %v1697_v1 = vpop.f32.mrf.mxu1 }
 0x265   :  { %343 = vrot.lane.b32.xlu0 %v1995_v53, %s1848_s2 }
 0x269   :  { %349 = vrot.lane.b32.xlu0 %v1950_v39, %s1848_s2 }
 0x26c   :  { %341 = vrot.lane.b32.xlu1 %v1962_v45, %s1848_s2 }
 0x26d   :  { %353 = vrot.lane.b32.xlu0 %v1969_v47, %s1848_s2 }
 0x270   :  { %345 = vrot.lane.b32.xlu1 %v1972_v48, %s1848_s2 }
 0x271   :  { %357 = vrot.lane.b32.xlu0 %v2003_v56, %s1848_s2 }
 0x274   :  { %347 = vrot.lane.b32.xlu1 %v2007_v57, %s1848_s2 }
 0x275   :  { %361 = vrot.lane.b32.xlu0 %v2020_v60, %s1848_s2 }
 0x278   :  { %351 = vrot.lane.b32.xlu1 %v1959_v44, %s1848_s2 }
 0x279   :  { %365 = vrot.lane.b32.xlu0 %v1979_v49, %s1848_s2 }
 0x27c   :  { %355 = vrot.lane.b32.xlu1 %v1983_v50, %s1848_s2 }
 0x280   :  { %359 = vrot.lane.b32.xlu1 %v2017_v59, %s1848_s2 }
 0x284   :  { %363 = vrot.lane.b32.xlu1 %v2028_v61, %s1848_s2 }
 0x288   :  { %367 = vrot.lane.b32.xlu1 %v1991_v52, %s1848_s2 }
 0x28c   :  { %371 = vrot.lane.b32.xlu1 %v2039_v63, %s1848_s2 }
 0x2d8   :  { %v720_v39 = vpop.xlane.xlu0 %719 }
 0x2d9   :  { %v724_v44 = vsub.f32 %v541_v46, %v720_v39 }
 0x2db   :  { %v726_v45 = vmul.f32 1.442695, %v724_v44 }
 0x2dc   :  { %v344_v57 = vpop.permute.xlu0 %343 }
 0x2dd   :  { %1738 = vpow2.f32 %v726_v45 }
 0x2e0   :  { %v350_v52 = vpop.permute.xlu0 %349 }
 0x2e4   :  { %v723_v47 = vpop.xlane.xlu1 %722  ;;  %v354_v15 = vpop.permute.xlu0 %353 }
 0x2e5   :  { %v725_v48 = vsub.f32 %v713_v58, %v723_v47 }
 0x2e7   :  { %v728_v49 = vmul.f32 1.442695, %v725_v48 }
 0x2e8   :  { %v342_v50 = vpop.permute.xlu1 %341  ;;  %v358_v8 = vpop.permute.xlu0 %357 }
 0x2e9   :  { %1740 = vpow2.f32 %v728_v49  ;;  %v740_v63 = vcombine.low %v342_v50, %v344_v57  ;;  %v1087_v50 = vld [vmem:[#allocation7 + $0x18] sm:$0xff]  ;;  %v1084_v57 = vld [vmem:[#allocation7] sm:$0xff] }
 0x2ea   :  { %v1739_v53 = vpop.eup %1738  ;;  %1708 = vmatprep.subr.mxu0 %v1087_v50 }
 0x2eb   :  { %v730_v56 = vsel %vm717_vm2, %v1739_v53, 0.0  ;;  %v750_v21 = vrot.slane %v740_v63, %v1946_v32  ;;  %1709 = vmatpush3.msra.mxu0 %v1087_v50 }
 0x2ec   :  { %731 = vadd.xlane.f32.xlu0 %v730_v56  ;;  %v346_v59 = vpop.permute.xlu1 %345  ;;  %v362_v19 = vpop.permute.xlu0 %361  ;;  %v1085_v56 = vld [vmem:[#allocation7 + $0x8] sm:$0xff] }
 0x2f0   :  { %v348_v60 = vpop.permute.xlu1 %347  ;;  %v366_v30 = vpop.permute.xlu0 %365 }
 0x2f1   :  { %v741_v61 = vcombine.low %v346_v59, %v348_v60  ;;  %v1849_v59 = vmov 1934713408  }
 0x2f3   :  { %v757_v5 = vrot.slane %v741_v61, %v1946_v32 }
 0x2f4   :  { %v352_v2 = vpop.permute.xlu1 %351 }
 0x2f5   :  { %v742_v6 = vcombine.low %v350_v52, %v352_v2  ;;  %v772_v23 = vcombine.low %v750_v21, %v757_v5 }
 0x2f6   :  { %v1741_v3 = vpop.eup %1740 }
 0x2f7   :  { %v733_v13 = vsel %vm717_vm2, %v1741_v3, 0.0  ;;  %v764_v24 = vrot.slane %v742_v6, %v1946_v32  ;;  %v780_v27 = vrot.slane %v772_v23, %v1946_v32 }
 0x2f8   :  { %734 = vadd.xlane.f32.xlu0 %v733_v13  ;;  %v356_v20 = vpop.permute.xlu1 %355 }
 0x2f9   :  { %v743_v22 = vcombine.low %v354_v15, %v356_v20 }
 0x2fb   :  { %v771_v25 = vrot.slane %v743_v22, %v1946_v32 }
 0x2fc   :  { %v360_v31 = vpop.permute.xlu1 %359 }
 0x2fd   :  { %v773_v26 = vcombine.low %v764_v24, %v771_v25  ;;  %v863_v38 = vcombine.low %v358_v8, %v360_v31 }
 0x2ff   :  { %v787_v28 = vrot.slane %v773_v26, %v1946_v32 }
 0x300   :  { %v364_v34 = vpop.permute.xlu1 %363 }
 0x301   :  { %v788_v29 = vcombine.low %v780_v27, %v787_v28  ;;  %v864_v36 = vcombine.low %v362_v19, %v364_v34 }
 0x303   :  { %1699 = vmatpush3.msra.mxu1 %v788_v29  ;;  %v880_v41 = vrot.slane %v864_v36, %v1946_v32 }
 0x304   :  { %1703 = vmatprep.subr.mxu1 %v1846_v54  ;;  %v368_v35 = vpop.permute.xlu1 %367 }
 0x305   :  { %v865_v42 = vcombine.low %v366_v30, %v368_v35 }
 0x307   :  { %v887_v0 = vrot.slane %v865_v42, %v1946_v32 }
 0x308   :  { %v372_v46 = vpop.permute.xlu1 %371 }
 0x30e   :  { %369 = vrot.lane.b32.xlu0 %v2031_v62, %s1848_s2  ;;  %v873_v62 = vrot.slane %v863_v38, %v1946_v32 }
 0x310   :  { %v895_v58 = vcombine.low %v873_v62, %v880_v41 }
 0x312   :  { %v903_v44 = vrot.slane %v895_v58, %v1946_v32 }
 0x375   :  { %v732_v33 = vpop.xlane.xlu0 %731 }
 0x376   :  { %1742 = vrcp.f32 %v732_v33 }
 0x381   :  { %v735_v37 = vpop.xlane.xlu0 %734 }
 0x382   :  { %1744 = vrcp.f32 %v735_v37 }
 0x383   :  { %v1743_v40 = vpop.eup %1742 }
 0x384   :  { %v738_v43 = vmul.f32 %v1743_v40, %v1739_v53  ;;  %v1086_v53 = vld [vmem:[#allocation7 + $0x10] sm:$0xff] }
 0x385   :  { %v370_v51 = vpop.permute.xlu0 %369  ;;  %1710 = vmatprep.subr.mxu0 %v1086_v53 }
 0x386   :  { %v866_v55 = vcombine.low %v370_v51, %v372_v46  ;;  %1701 = vmatmul.mubr.msk.f32.vlgmr.msra.gmra.mxu1 %vm717_vm2, %v738_v43  ;;  %1711 = vmatpush3.msra.mxu0 %v1086_v53 }
 0x387   :  { %1705 = vmatprep.mubr.msk.f32.mxu1 %vm1847_vm1, %v1846_v54  ;;  %1712 = vmatprep.subr.mxu0 %v1085_v56 }
 0x388   :  { %v894_v1 = vrot.slane %v866_v55, %v1946_v32  ;;  %1713 = vmatpush3.msra.mxu0 %v1085_v56 }
 0x389   :  { %1714 = vmatprep.subr.mxu0 %v1084_v57 }
 0x38a   :  { %v896_v39 = vcombine.low %v887_v0, %v894_v1  ;;  %1715 = vmatpush3.msra.mxu0 %v1084_v57 }
 0x38c   :  { %v910_v45 = vrot.slane %v896_v39, %v1946_v32  ;;  %v1003_v32 = vunpack.c.l.s4 %v1849_v59 }
 0x38e   :  { %v911_v47 = vcombine.low %v903_v44, %v910_v45  ;;  %v1004_v61 = vunpack.c.0.s8 %v1003_v32 }
 0x38f   :  { %v1745_v48 = vpop.eup %1744 }
 0x390   :  { %1704 = vmatpush3.msra.mxu1 %v911_v47  ;;  %v739_v49 = vmul.f32 %v1745_v48, %v1741_v3  ;;  %v1007_v3 = vsub.s32 %v1004_v61, %v1907_v4 }
 0x392   :  { %1706 = vmatmul.mubr.msk.f32.vlgmr.msra.gmra.mxu1 %vm717_vm2, %v739_v49 }
 0x446   :  { %v859_v60 = vpop.f32.mrf.mxu1 }
 0x447   :  { %v986_v2 = vcombine.high %v859_v60, %v1846_v54  ;;  %v993_v63 = vrot.slane %v859_v60, %v1910_v7 }
 0x448   :  { %v1702_v52 = vpop.f32.mrf.mxu1 }
 0x449   :  { %v1000_v5 = vrot.slane %v986_v2, %v1910_v7  ;;  %v1001_v6 = vcombine.high %v993_v63, %v1846_v54  ;;  %v1008_v13 = vrot.slane %v993_v63, %v1007_v3 }
 0x44b   :  { %v1016_v15 = vcombine.high %v1000_v5, %v1846_v54  ;;  %v1023_v20 = vrot.slane %v1000_v5, %v1007_v3  ;;  %v1015_v24 = vrot.slane %v1001_v6, %v1007_v3  ;;  %v1031_v26 = vcombine.high %v1008_v13, %v1846_v54  ;;  %v1652_v5 = vld [vmem:[%s2296_s4] ss:$0 sm:$0xff] }
 0x44d   :  { %v1030_v8 = vrot.slane %v1016_v15, %v1007_v3  ;;  %v1033_v19 = vcombine.high %v1023_v20, %v1846_v54  ;;  %v1032_v35 = vcombine.high %v1015_v24, %v1846_v54  ;;  %v1114_v37 = vrot.slane %v1031_v26, 6 }
 0x44e   :  { %v1120_v42 = vrot.slane %v1015_v24, 4 }
 0x44f   :  { %v1034_v62 = vcombine.high %v1030_v8, %v1846_v54  ;;  %v1134_v55 = vrot.slane %v1033_v19, 6  ;;  %v1126_v47 = vrot.slane %v1032_v35, 2  ;;  %v1138_v48 = vrot.slane %v1030_v8, 4 }
 0x451   :  { %v1142_v32 = vrot.slane %v1034_v62, 2 }
 0x452   :  { %v982_v21 = vpop.f32.mrf.mxu1 }
 0x453   :  { %v1035_v22 = vcombine.high %v982_v21, %v1846_v54  ;;  %v1042_v23 = vrot.slane %v982_v21, %v1910_v7 }
 0x454   :  { %v1707_v25 = vpop.f32.mrf.mxu1 }
 0x455   :  { %v1049_v27 = vrot.slane %v1035_v22, %v1910_v7  ;;  %v1050_v28 = vcombine.high %v1042_v23, %v1846_v54  ;;  %v1057_v29 = vrot.slane %v1042_v23, %v1007_v3 }
 0x457   :  { %v1064_v30 = vrot.slane %v1050_v28, %v1007_v3  ;;  %v1065_v31 = vcombine.high %v1049_v27, %v1846_v54  ;;  %v1072_v33 = vrot.slane %v1049_v27, %v1007_v3  ;;  %v1080_v34 = vcombine.high %v1057_v29, %v1846_v54 }
 0x458   :  { %v1111_v36 = vrot.slane %v1057_v29, 7 }
 0x459   :  { %v1079_v38 = vrot.slane %v1065_v31, %v1007_v3  ;;  %v1082_v40 = vcombine.high %v1072_v33, %v1846_v54  ;;  %v1117_v41 = vrot.slane %v1080_v34, 5  ;;  %v1081_v43 = vcombine.high %v1064_v30, %v1846_v54 }
 0x45a   :  { %v1113_v46 = vsel %vm1112_vm3, %v1111_v36, %v1008_v13  ;;  %v1132_v51 = vrot.slane %v1072_v33, 7  ;;  %v1123_v44 = vrot.slane %v1064_v30, 3 }
 0x45b   :  { %v1116_v58 = vsel %vm1115_vm4, %v1114_v37, %v1113_v46  ;;  %v1136_v0 = vrot.slane %v1082_v40, 5  ;;  %v1083_v1 = vcombine.high %v1079_v38, %v1846_v54  ;;  %v1140_v56 = vrot.slane %v1079_v38, 3 }
 0x45c   :  { %v1119_v39 = vsel %vm1118_vm5, %v1117_v41, %v1116_v58  ;;  %v1133_v45 = vsel %vm1112_vm3, %v1132_v51, %v1023_v20  ;;  %v1129_v59 = vrot.slane %v1081_v43, 1 }
 0x45d   :  { %v1135_v49 = vsel %vm1115_vm4, %v1134_v55, %v1133_v45  ;;  %v1122_v50 = vsel %vm1121_vm6, %v1120_v42, %v1119_v39  ;;  %v1144_v2 = vrot.slane %v1083_v1, 1 }
 0x45e   :  { %v1137_v53 = vsel %vm1118_vm5, %v1136_v0, %v1135_v49  ;;  %v1125_v57 = vsel %vm1124_vm7, %v1123_v44, %v1122_v50 }
 0x45f   :  { %v1128_v54 = vsel %vm1127_vm8, %v1126_v47, %v1125_v57  ;;  %v1139_v60 = vsel %vm1121_vm6, %v1138_v48, %v1137_v53 }
 0x460   :  { %v1131_v52 = vsel %vm1130_vm9, %v1129_v59, %v1128_v54  ;;  %v1141_v61 = vsel %vm1124_vm7, %v1140_v56, %v1139_v60 }
 0x461   :  { %1716 = vmatprep.mubr.msk.f32.mxu0 %vm129_vm0, %v1131_v52  ;;  %v1143_v63 = vsel %vm1127_vm8, %v1142_v32, %v1141_v61 }
 0x462   :  { %v1145_v3 = vsel %vm1130_vm9, %v1144_v2, %v1143_v63 }
 0x463   :  { %1717 = vmatmul.mubr.msk.f32.vlgmr.msra.gmra.mxu0 %vm129_vm0, %v1145_v3 }
 0x523   :  { %v1718_v6 = vpop.f32.mrf.mxu0 }
 0x524   :  { %v1222_v13 = vadd.f32 %v1718_v6, %v1652_v5  ;;  %v1850_v6 = vmov 269488144  }
 0x525   :  { %v1216_v15 = vpop.f32.mrf.mxu0 }
 0x526   :  { %v1244_v20 = vcombine.high %v1222_v13, %v1222_v13  ;;  %v1251_v21 = vrot.slane %v1222_v13, %v1910_v7  ;;  %v1217_v22 = vadd.f32 %v1652_v5, %v1216_v15  ;;  %v1397_v13 = vunpack.c.l.s4 %v1850_v6 }
 0x527   :  { %v1851_v15 = vmov 842150450  }
 0x528   :  { %v1258_v23 = vrot.slane %v1244_v20, %v1910_v7  ;;  %v1259_v24 = vcombine.high %v1251_v21, %v1251_v21  ;;  %v1227_v25 = vcombine.high %v1217_v22, %v1217_v22  ;;  %v2187_v26 = vadd.f32 %v1251_v21, %v1922_v14 }
 0x529   :  { %v1234_v27 = vrot.slane %v1217_v22, %v1910_v7  ;;  %v1404_v20 = vunpack.c.l.s4 %v1851_v15  ;;  %v1852_v22 = vmov 1414812756  }
 0x52a   :  { %v1260_v28 = vcombine.high %v1258_v23, %v1258_v23  ;;  %v2191_v29 = vadd.f32 %v1259_v24, %v1926_v16  ;;  %v2194_v8 = vadd.f32 %v1258_v23, %v1928_v17  ;;  %v1241_v19 = vrot.slane %v1227_v25, %v1910_v7 }
 0x52b   :  { %v1242_v30 = vcombine.high %v1234_v27, %v1234_v27  ;;  %v2198_v31 = vadd.f32 %v1234_v27, %v1912_v9  ;;  %v1334_v62 = vmul.f32 %v2187_v26, %v2187_v26  ;;  %v1411_v23 = vunpack.c.l.s4 %v1852_v22 }
 0x52c   :  { %v2201_v33 = vadd.f32 %v1260_v28, %v1930_v18  ;;  %v1243_v14 = vcombine.high %v1241_v19, %v1241_v19  ;;  %v2204_v34 = vadd.f32 %v1241_v19, %v1916_v11  ;;  %v1302_v16 = vcombine.low %v2187_v26, %v2191_v29 }
 0x52d   :  { %v2209_v35 = vadd.f32 %v1242_v30, %v1914_v10  ;;  %v1330_v17 = vmul.f32 %v2198_v31, %v2198_v31  ;;  %v1335_v18 = vmul.f32 %v2191_v29, %v2191_v29  ;;  %v1336_v11 = vmul.f32 %v2194_v8, %v2194_v8 }
 0x52e   :  { %v2214_v36 = vadd.f32 %v1243_v14, %v1918_v12  ;;  %v1303_v9 = vcombine.low %v2194_v8, %v2201_v33  ;;  %v1310_v37 = vrot.slane %v1302_v16, %v1910_v7  ;;  %v1337_v12 = vmul.f32 %v2201_v33, %v2201_v33 }
 0x52f   :  { %v1285_v10 = vcombine.low %v2198_v31, %v2209_v35  ;;  %v1331_v38 = vmul.f32 %v2209_v35, %v2209_v35  ;;  %v1332_v42 = vmul.f32 %v2204_v34, %v2204_v34  ;;  %v1363_v39 = vcombine.low %v1334_v62, %v1335_v18 }
 0x530   :  { %v1317_v40 = vrot.slane %v1303_v9, %v1910_v7  ;;  %v1286_v41 = vcombine.low %v2204_v34, %v2214_v36  ;;  %v1333_v43 = vmul.f32 %v2214_v36, %v2214_v36  ;;  %v1364_v1 = vcombine.low %v1336_v11, %v1337_v12  ;;  %v1655_v11 = vld [vmem:[%s2297_s5] ss:$0 sm:$0xff]  ;;  %s1854_s5 = smov [#allocation8]  }
 0x531   :  { %v1293_v46 = vrot.slane %v1285_v10, %v1910_v7  ;;  %v1346_v51 = vcombine.low %v1330_v17, %v1331_v38  ;;  %v1371_v56 = vrot.slane %v1363_v39, %v1910_v7  ;;  %v1853_v28 = vmov 1987475062  }
 0x532   :  { %v1318_v55 = vcombine.low %v1310_v37, %v1317_v40  ;;  %v1300_v58 = vrot.slane %v1286_v41, %v1910_v7  ;;  %v1347_v0 = vcombine.low %v1332_v42, %v1333_v43  ;;  %v1378_v53 = vrot.slane %v1364_v1, %v1910_v7  ;;  %v1656_v37 = vld [vmem:[%s2298_s6] ss:$0 sm:$0xff]  ;;  %s1630_s6 = sshll.u32 %s1854_s5, 4  ;;  %s1631_s6 = int_to_ptr.vmem [resolvable:$true] %s1630_s6 }
 0x533   :  { %v1354_v47 = vrot.slane %v1346_v51, %v1910_v7  ;;  %v1418_v19 = vunpack.c.l.s4 %v1853_v28  ;;  %v1398_v14 = vunpack.c.0.s8 %v1397_v13  ;;  %v1405_v16 = vunpack.c.0.s8 %v1404_v20  ;;  %s1810_s25 = scalar_lea.vmem %s1631_s6, 256  ;;  %p1815_p2 = scmp.lt.s32.totalorder %s1631_s6, %s1631_s6 }
 0x534   :  { %v1324_v44 = vsel %vm129_vm0, %v1318_v55, 0.0  ;;  %v1301_v45 = vcombine.low %v1293_v46, %v1300_v58  ;;  %v1361_v48 = vrot.slane %v1347_v0, %v1910_v7  ;;  %v1379_v59 = vcombine.low %v1371_v56, %v1378_v53  ;;  %p1811_p1 = scmp.ne.s32.totalorder %s1631_s6, %s1810_s25  ;;  %p1816_p3 = scmp.lt.s32.totalorder %s1810_s25, %s1810_s25 }
 0x535   :  { %1325 = vadd.xlane.f32.xlu1 %v1324_v44  ;;  %v1412_v17 = vunpack.c.0.s8 %v1411_v23  ;;  %v1419_v18 = vunpack.c.0.s8 %v1418_v19  ;;  %v1401_v10 = vsub.s32 %v1398_v14, %v1907_v4  ;;  %v1408_v38 = vsub.s32 %v1405_v16, %v1907_v4 }
 0x536   :  { %v1321_v49 = vsel %vm129_vm0, %v1301_v45, 0.0  ;;  %v1362_v50 = vcombine.low %v1354_v47, %v1361_v48  ;;  %v1385_v32 = vsel %vm129_vm0, %v1379_v59, 0.0  ;;  %v1552_v41 = vcombine.high %v1655_v11, %v1655_v11  ;;  %p1817_p4 = por %p1816_p3, %p1815_p2 }
 0x537   :  { %1322 = vadd.xlane.f32.xlu0 %v1321_v49  ;;  %v1415_v12 = vsub.s32 %v1412_v17, %v1907_v4  ;;  %v1422_v40 = vsub.s32 %v1419_v18, %v1907_v4  ;;  %v1559_v42 = vrot.slane %v1655_v11, %v1910_v7  ;;  %v1587_v43 = vcombine.high %v1656_v37, %v1656_v37 }
 0x538   :  { %v1382_v57 = vsel %vm129_vm0, %v1362_v50, 0.0  ;;  %v1566_v58 = vrot.slane %v1552_v41, %v1910_v7  ;;  %v1594_v1 = vrot.slane %v1656_v37, %v1910_v7  ;;  %p1818_p5 = pnand %p1817_p4, %p1811_p1 }
 0x539   :  { %v1567_v0 = vcombine.high %v1559_v42, %v1559_v42  ;;  %v1601_v39 = vrot.slane %v1587_v43, %v1910_v7 }
 0x53b   :  { %1383 = vadd.xlane.f32.xlu0 %v1382_v57 }
 0x53f   :  { %1386 = vadd.xlane.f32.xlu0 %v1385_v32 }
 0x5be   :  { %v1326_v60 = vpop.xlane.xlu1 %1325 }
 0x5bf   :  { %v2248_v2 = vmul.f32 0.03125, %v1326_v60  ;;  %v1602_v60 = vcombine.high %v1594_v1, %v1594_v1 }
 0x5c0   :  { %v1323_v54 = vpop.xlane.xlu0 %1322 }
 0x5c1   :  { %v1328_v52 = vmul.f32 0.03125, %v1323_v54  ;;  %v1391_v25 = vmul.f32 %v2248_v2, %v2248_v2  ;;  %v1430_v44 = vrot.slane %v2248_v2, %v1401_v10  ;;  %v1437_v45 = vrot.slane %v2248_v2, %v1408_v38 }
 0x5c2   :  { %v1444_v4 = vrot.slane %v2248_v2, %v1415_v12  ;;  %v1451_v47 = vrot.slane %v2248_v2, %v1422_v40  ;;  %v1568_v54 = vcombine.high %v1566_v58, %v1566_v58 }
 0x5c3   :  { %v1390_v63 = vmul.f32 %v1328_v52, %v1328_v52  ;;  %v1402_v46 = vrot.slane %v1328_v52, %v1401_v10  ;;  %v1409_v51 = vrot.slane %v1328_v52, %v1408_v38  ;;  %v1416_v62 = vrot.slane %v1328_v52, %v1415_v12 }
 0x5c4   :  { %v1384_v61 = vpop.xlane.xlu0 %1383  ;;  %v1423_v55 = vrot.slane %v1328_v52, %v1422_v40  ;;  %v1603_v52 = vcombine.high %v1601_v39, %v1601_v39 }
 0x5c5   :  { %v1388_v3 = vmul.f32 0.03125, %v1384_v61  ;;  %v1460_v49 = vsub.f32 %v2198_v31, %v1402_v46  ;;  %v1461_v50 = vsub.f32 %v2209_v35, %v1409_v51  ;;  %v1462_v53 = vsub.f32 %v2204_v34, %v1416_v62 }
 0x5c6   :  { %v1463_v56 = vsub.f32 %v2214_v36, %v1423_v55  ;;  %v1464_v31 = vsub.f32 %v2187_v26, %v1430_v44  ;;  %v1465_v35 = vsub.f32 %v2191_v29, %v1437_v45  ;;  %v1466_v34 = vsub.f32 %v2194_v8, %v1444_v4 }
 0x5c7   :  { %v1392_v5 = vsub.f32 %v1388_v3, %v1390_v63  ;;  %v1467_v36 = vsub.f32 %v2201_v33, %v1451_v47 }
 0x5c8   :  { %v1387_v21 = vpop.xlane.xlu0 %1386 }
 0x5c9   :  { %v1468_v24 = vadd.f32 1e-05, %v1392_v5  ;;  %v1389_v27 = vmul.f32 0.03125, %v1387_v21 }
 0x5cb   :  { %1746 = vrsqrt.f32 %v1468_v24  ;;  %v1393_v30 = vsub.f32 %v1389_v27, %v1391_v25 }
 0x5cd   :  { %v1469_v9 = vadd.f32 1e-05, %v1393_v30 }
 0x5cf   :  { %1748 = vrsqrt.f32 %v1469_v9 }
 0x5d8   :  { %v1747_v48 = vpop.eup %1746 }
 0x5d9   :  { %v1480_v57 = vrot.slane %v1747_v48, %v1401_v10  ;;  %v1487_v59 = vrot.slane %v1747_v48, %v1408_v38  ;;  %v1494_v7 = vrot.slane %v1747_v48, %v1415_v12  ;;  %v1501_v32 = vrot.slane %v1747_v48, %v1422_v40 }
 0x5db   :  { %v1538_v61 = vmul.f32 %v1480_v57, %v1460_v49  ;;  %v1539_v63 = vmul.f32 %v1487_v59, %v1461_v50  ;;  %v1540_v2 = vmul.f32 %v1494_v7, %v1462_v53  ;;  %v1541_v3 = vmul.f32 %v1501_v32, %v1463_v56 }
 0x5dc   :  { %v1749_v5 = vpop.eup %1748 }
 0x5dd   :  { %v1508_v6 = vrot.slane %v1749_v5, %v1401_v10  ;;  %v1515_v13 = vrot.slane %v1749_v5, %v1408_v38  ;;  %v1522_v15 = vrot.slane %v1749_v5, %v1415_v12  ;;  %v1529_v20 = vrot.slane %v1749_v5, %v1422_v40 }
 0x5de   :  { %v1573_v21 = vmul.f32 %v1559_v42, %v1538_v61  ;;  %v1574_v22 = vmul.f32 %v1567_v0, %v1539_v63  ;;  %v1575_v23 = vmul.f32 %v1566_v58, %v1540_v2  ;;  %v1576_v24 = vmul.f32 %v1568_v54, %v1541_v3 }
 0x5df   :  { %v1542_v25 = vmul.f32 %v1508_v6, %v1464_v31  ;;  %v1543_v27 = vmul.f32 %v1515_v13, %v1465_v35  ;;  %v1544_v28 = vmul.f32 %v1522_v15, %v1466_v34  ;;  %v1545_v19 = vmul.f32 %v1529_v20, %v1467_v36 }
 0x5e0   :  { %v1608_v30 = vadd.f32 %v1594_v1, %v1573_v21  ;;  %v1609_v26 = vadd.f32 %v1602_v60, %v1574_v22  ;;  %v1610_v14 = vadd.f32 %v1601_v39, %v1575_v23  ;;  %v1611_v29 = vadd.f32 %v1603_v52, %v1576_v24 }
 0x5e1   :  { %v1577_v8 = vmul.f32 %v1559_v42, %v1542_v25  ;;  %v1578_v33 = vmul.f32 %v1567_v0, %v1543_v27  ;;  %v1579_v16 = vmul.f32 %v1566_v58, %v1544_v28  ;;  %v1580_v17 = vmul.f32 %v1568_v54, %v1545_v19 }
 0x5e2   :  { %1617 = vst.msk [vmem:[#allocation8] sm:$0x3] %vm1616_vm10, %v1608_v30  ;;  %1618 = vst.msk [vmem:[#allocation8 + $0x2] sm:$0x3] %vm1616_vm10, %v1609_v26 }
 0x5e3   :  { %1619 = vst.msk [vmem:[#allocation8 + $0x4] sm:$0x3] %vm1616_vm10, %v1610_v14  ;;  %1620 = vst.msk [vmem:[#allocation8 + $0x6] sm:$0x3] %vm1616_vm10, %v1611_v29  ;;  %v1612_v9 = vadd.f32 %v1594_v1, %v1577_v8  ;;  %v1613_v18 = vadd.f32 %v1602_v60, %v1578_v33  ;;  %v1614_v11 = vadd.f32 %v1601_v39, %v1579_v16 }
 0x5e4   :  { %v1615_v37 = vadd.f32 %v1603_v52, %v1580_v17 }
 0x5e5   :  { %1621 = vst.msk [vmem:[#allocation8 + $0x8] sm:$0x3] %vm1616_vm10, %v1612_v9  ;;  %1622 = vst.msk [vmem:[#allocation8 + $0xa] sm:$0x3] %vm1616_vm10, %v1613_v18 }
 0x5e6   :  { %1623 = vst.msk [vmem:[#allocation8 + $0xc] sm:$0x3] %vm1616_vm10, %v1614_v11  ;;  %1624 = vst.msk [vmem:[#allocation8 + $0xe] sm:$0x3] %vm1616_vm10, %v1615_v37 }
 0x5e7   :  { %1821 = shalt.err (!%p1818_p5)
}
 0x5e8   :  { %1636 = dma.vmem_to_hbm [thread:$0]  %s1631_s6, 256, %s2299_s7, [#allocation4], %s1840_s11, %s1840_s11, %s1841_s12  }
 0x5e9   :  { %1834 = dma.done.wait [#allocation4], 256  }
 0x5ea   :  { %1835 = vsyncadd [#allocation4], 4294967040 }
 0x5eb   :  { %1640 = vsyncpa [#allocation3], 1 }
 0x5ec   :  { %1641 = vsyncpa [#allocation6], 1 }
 0x5ed   :  { %1642 = vsyncpa [#allocation4], 1 }

// kernel: tpu_custom_call.1
= control target key start
LH: loop header
LB: loop body
LE: loop exit
PB: predicated region body
PF: predicated region fallthrough
CT: control target
= control target key end

     0   :  { %12 = vsyncpa [#allocation3], 0  ;;  %s1881_s0 = inlined_call_operand.hbm [shape: f32[8,2,32], index: 0, kind: input, shape index: {}]   ;;  %s1882_s1 = inlined_call_operand.hbm [shape: f32[32,96], index: 1, kind: input, shape index: {}]   ;;  %s1883_s2 = inlined_call_operand.vmem [shape: f32[1,96], index: 2, kind: input, shape index: {}]   ;;  %s1884_s3 = inlined_call_operand.hbm [shape: f32[32,32], index: 3, kind: input, shape index: {}]   ;;  %s1885_s4 = inlined_call_operand.vmem [shape: f32[1,32], index: 4, kind: input, shape index: {}]   ;;  %s1886_s5 = inlined_call_operand.vmem [shape: f32[1,32], index: 5, kind: input, shape index: {}]   ;;  %s1887_s6 = inlined_call_operand.vmem [shape: f32[1,32], index: 6, kind: input, shape index: {}]   ;;  %s1888_s7 = inlined_call_operand.hbm [shape: f32[8,2,32], index: 7, kind: output, shape index: {}]  }
   0x1   :  { %13 = vsyncpa [#allocation6], 0 }
   0x2   :  { %14 = vsyncpa [#allocation4], 0  ;;  %s1580_s24 = smov [#allocation5]  }
   0x3   :  { %s32_s25 = sshll.u32 %s1580_s24, 4  ;;  %s33_s25 = int_to_ptr.vmem [resolvable:$true] %s32_s25 }
   0x4   :  { %s1502_s26 = scalar_lea.vmem %s33_s25, 512  ;;  %p1507_p1 = scmp.lt.s32.totalorder %s33_s25, %s33_s25 }
   0x5   :  { %p1503_p0 = scmp.ne.s32.totalorder %s33_s25, %s1502_s26  ;;  %p1508_p2 = scmp.lt.s32.totalorder %s1502_s26, %s1502_s26 }
   0x7   :  { %p1509_p3 = por %p1508_p2, %p1507_p1 }
   0x9   :  { %p1510_p4 = pnand %p1509_p3, %p1503_p0 }
   0xb   :  { %1513 = shalt.err (!%p1510_p4)
}
   0xc   :  { %s1581_s27 = smov 128   ;;  %s1582_s28 = smov 8  }
   0xd   :  { %38 = dma.hbm_to_vmem [thread:$0]  %s1882_s1, 512, %s33_s25, [#allocation6], %s1581_s27, %s1581_s27, %s1582_s28  }
   0xe   :  { %s1583_s8 = smov [#allocation2]  }
   0xf   :  { %s20_s9 = sshll.u32 %s1583_s8, 4  ;;  %s21_s9 = int_to_ptr.vmem [resolvable:$true] %s20_s9 }
  0x10   :  { %s1522_s10 = scalar_lea.vmem %s21_s9, 256  ;;  %p1527_p6 = scmp.lt.s32.totalorder %s21_s9, %s21_s9 }
  0x11   :  { %p1523_p5 = scmp.ne.s32.totalorder %s21_s9, %s1522_s10  ;;  %p1528_p7 = scmp.lt.s32.totalorder %s1522_s10, %s1522_s10 }
  0x13   :  { %p1529_p8 = por %p1528_p7, %p1527_p6 }
  0x15   :  { %p1530_p9 = pnand %p1529_p8, %p1523_p5 }
  0x17   :  { %1533 = shalt.err (!%p1530_p9)
}
  0x18   :  { %s1584_s11 = smov 32   ;;  %s1585_s12 = smov 2  }
  0x19   :  { %26 = dma.hbm_to_vmem [thread:$0]  %s1881_s0, 256, %s21_s9, [#allocation3], %s1584_s11, %s1584_s11, %s1585_s12  }
  0x1a   :  { %s1586_s1 = smov [#allocation7]  }
  0x1b   :  { %s46_s15 = sshll.u32 %s1586_s1, 4  ;;  %s47_s15 = int_to_ptr.vmem [resolvable:$true] %s46_s15 }
  0x1c   :  { %s1542_s16 = scalar_lea.vmem %s47_s15, 512  ;;  %p1547_p11 = scmp.lt.s32.totalorder %s47_s15, %s47_s15 }
  0x1d   :  { %p1543_p10 = scmp.ne.s32.totalorder %s47_s15, %s1542_s16  ;;  %p1548_p12 = scmp.lt.s32.totalorder %s1542_s16, %s1542_s16 }
  0x1f   :  { %p1549_p13 = por %p1548_p12, %p1547_p11 }
  0x21   :  { %p1550_p0 = pnand %p1549_p13, %p1543_p10 }
  0x23   :  { %1553 = shalt.err (!%p1550_p0)
}
  0x24   :  { %52 = dma.hbm_to_vmem [thread:$0]  %s1884_s3, 512, %s47_s15, [#allocation6], %s1581_s27, %s1581_s27, %s1582_s28  }
  0x25   :  { %1574 = dma.done.wait [#allocation3], 256  }
  0x26   :  { %1575 = vsyncadd [#allocation3], 4294967040 }
  0x27   :  { %1576 = dma.done.wait [#allocation6], 1024  }
  0x28   :  { %1577 = vsyncadd [#allocation6], 4294966272  ;;  %v100_v0 = vlaneseq  ;;  %v1587_v1 = vmov 1983009808   ;;  %v79_v5 = vld [vmem:[#allocation5 + $0x18] sm:$0xff]  ;;  %v78_v6 = vld [vmem:[#allocation5 + $0x10] sm:$0xff] }
  0x29   :  { %v98_v2 = vunpack.c.l.s4 %v1587_v1  ;;  %1422 = vmatprep.subr.mxu0 %v79_v5  ;;  %v77_v8 = vld [vmem:[#allocation5 + $0x8] sm:$0xff]  ;;  %v1655_v9 = vld [vmem:[#allocation2] sm:$0x3]  ;;  %v1657_v10 = vld [vmem:[#allocation2 + $0x2] sm:$0x3]  ;;  %vm129_vm0 = vcmask 261120  }
  0x2a   :  { %v1650_v4 = vshrl.u32 %v100_v0, 7  ;;  %1423 = vmatpush3.msra.mxu0 %v79_v5  ;;  %v1659_v11 = vld [vmem:[#allocation2 + $0x4] sm:$0x3]  ;;  %v1661_v12 = vld [vmem:[#allocation2 + $0x6] sm:$0x3]  ;;  %v95_v13 = vcombine.low %v1655_v9, %v1657_v10  ;;  %v76_v19 = vld [vmem:[#allocation5] sm:$0xff] }
  0x2b   :  { %v99_v3 = vunpack.c.0.s8 %v98_v2  ;;  %v1665_v14 = vld [vmem:[#allocation2 + $0x8] sm:$0x3]  ;;  %1424 = vmatprep.subr.mxu0 %v78_v6  ;;  %v96_v15 = vcombine.low %v1659_v11, %v1661_v12  ;;  %v1669_v16 = vld [vmem:[#allocation2 + $0xa] sm:$0x3]  ;;  %v1671_v17 = vld [vmem:[#allocation2 + $0xc] sm:$0x3] }
  0x2c   :  { %v1673_v18 = vld [vmem:[#allocation2 + $0xe] sm:$0x3]  ;;  %1425 = vmatpush3.msra.mxu0 %v78_v6  ;;  %v112_v21 = vcombine.low %v1665_v14, %v1669_v16  ;;  %v1588_v28 = vmov 0.0   ;;  %v1380_v29 = vld [vmem:[%s1883_s2] ss:$0 sm:$0xff]  ;;  %v1691_v36 = vsub.s32 0, %v1650_v4 }
  0x2d   :  { %v1653_v7 = vsub.s32 %v99_v3, %v1650_v4  ;;  %v113_v22 = vcombine.low %v1671_v17, %v1673_v18  ;;  %1426 = vmatprep.subr.mxu0 %v77_v8  ;;  %1433 = vmatprep.subr.mxu1 %v1588_v28  ;;  %vm293_vm1 = vcmask 1041409   ;;  %vm295_vm2 = vcmask 1042434   ;;  %s1590_s2 = smov 96   ;;  %s1591_s19 = smov 64  }
  0x2e   :  { %1427 = vmatpush3.msra.mxu0 %v77_v8  ;;  %vm297_vm3 = vcmask 1043459   ;;  %vm299_vm4 = vcmask 1044484   ;;  %vm301_vm5 = vcmask 1045509   ;;  %vm1589_vm6 = vmmov 0  }
  0x2f   :  { %v103_v20 = vrot.slane %v95_v13, %v1653_v7  ;;  %v110_v23 = vrot.slane %v96_v15, %v1653_v7  ;;  %v120_v24 = vrot.slane %v112_v21, %v1653_v7  ;;  %v127_v25 = vrot.slane %v113_v22, %v1653_v7  ;;  %1428 = vmatprep.subr.mxu0 %v76_v19 }
  0x30   :  { %1429 = vmatpush3.msra.mxu0 %v76_v19  ;;  %1435 = vmatprep.mubr.msk.f32.mxu1 %vm1589_vm6, %v1588_v28  ;;  %vm303_vm7 = vcmask 1046534   ;;  %vm305_vm8 = vcmask 1047559   ;;  %vm498_vm9 = vcmask 64512   ;;  %vm821_vm10 = vcmask 1040384  }
  0x31   :  { %v111_v26 = vcombine.low %v103_v20, %v110_v23  ;;  %v128_v27 = vcombine.low %v120_v24, %v127_v25  ;;  %vm1353_vm11 = vcmask 254976  }
  0x33   :  { %1430 = vmatprep.mubr.msk.f32.mxu0 %vm129_vm0, %v111_v26 }
  0x34   :  { %1431 = vmatmul.mubr.msk.f32.vlgmr.msra.gmra.mxu0 %vm129_vm0, %v128_v27 }
  0xf4   :  { %v1432_v30 = vpop.f32.mrf.mxu0 }
  0xf5   :  { %v206_v31 = vadd.f32 %v1432_v30, %v1380_v29 }
  0xf6   :  { %v200_v32 = vpop.f32.mrf.mxu0 }
  0xf7   :  { %v228_v33 = vcombine.high %v206_v31, %v206_v31  ;;  %v235_v34 = vrot.slane %v206_v31, %v1653_v7  ;;  %v201_v35 = vadd.f32 %v1380_v29, %v200_v32 }
  0xf9   :  { %v211_v37 = vcombine.high %v201_v35, %v201_v35  ;;  %v218_v38 = vrot.slane %v201_v35, %v1653_v7  ;;  %v242_v39 = vrot.slane %v228_v33, %v1653_v7  ;;  %v243_v40 = vcombine.high %v235_v34, %v235_v34 }
  0xfa   :  { %v1387_v44 = vrot.slane %v235_v34, 9  ;;  %v280_v45 = vrot.slane %v235_v34, %v1691_v36 }
  0xfb   :  { %v225_v41 = vrot.slane %v211_v37, %v1653_v7  ;;  %v226_v42 = vcombine.high %v218_v38, %v218_v38  ;;  %v1383_v43 = vrot.slane %v218_v38, 9  ;;  %v264_v46 = vrot.slane %v218_v38, %v1691_v36 }
  0xfc   :  { %v1388_v51 = vrot.slane %v243_v40, 9  ;;  %v244_v54 = vcombine.high %v242_v39, %v242_v39  ;;  %v1389_v59 = vrot.slane %v242_v39, 9  ;;  %v284_v60 = vrot.slane %v243_v40, %v1691_v36 }
  0xfd   :  { %v227_v47 = vcombine.high %v225_v41, %v225_v41  ;;  %v1384_v48 = vrot.slane %v226_v42, 9  ;;  %v1385_v49 = vrot.slane %v225_v41, 9  ;;  %v268_v50 = vrot.slane %v226_v42, %v1691_v36 }
  0xfe   :  { %v272_v52 = vrot.slane %v225_v41, %v1691_v36  ;;  %v386_v53 = vrot.slane %v1383_v43, %v1691_v36  ;;  %v402_v63 = vrot.slane %v1387_v44, %v1691_v36  ;;  %v288_v3 = vrot.slane %v242_v39, %v1691_v36 }
  0xff   :  { %v1386_v55 = vrot.slane %v227_v47, 9  ;;  %v276_v56 = vrot.slane %v227_v47, %v1691_v36  ;;  %v294_v57 = vsel %vm293_vm1, %v268_v50, %v264_v46  ;;  %v390_v58 = vrot.slane %v1384_v48, %v1691_v36 }
 0x100   :  { %v394_v61 = vrot.slane %v1385_v49, %v1691_v36  ;;  %v296_v62 = vsel %vm295_vm2, %v272_v52, %v294_v57  ;;  %v406_v6 = vrot.slane %v1388_v51, %v1691_v36  ;;  %v292_v13 = vrot.slane %v244_v54, %v1691_v36  ;;  %v833_v57 = vld [vmem:[#allocation7 + $0x18] sm:$0xff] }
 0x101   :  { %v398_v0 = vrot.slane %v1386_v55, %v1691_v36  ;;  %v415_v1 = vsel %vm293_vm1, %v390_v58, %v386_v53  ;;  %v298_v2 = vsel %vm297_vm3, %v276_v56, %v296_v62  ;;  %v1390_v19 = vrot.slane %v244_v54, 9  ;;  %1453 = vmatprep.subr.mxu0 %v833_v57  ;;  %v832_v58 = vld [vmem:[#allocation7 + $0x10] sm:$0xff] }
 0x102   :  { %v300_v5 = vsel %vm299_vm4, %v280_v45, %v298_v2  ;;  %v416_v8 = vsel %vm295_vm2, %v394_v61, %v415_v1  ;;  %v410_v22 = vrot.slane %v1389_v59, %v1691_v36  ;;  %1454 = vmatpush3.msra.mxu0 %v833_v57  ;;  %v831_v59 = vld [vmem:[#allocation7 + $0x8] sm:$0xff]  ;;  %v1592_v61 = vmov 1966171168  }
 0x103   :  { %v302_v15 = vsel %vm301_vm5, %v284_v60, %v300_v5  ;;  %v417_v20 = vsel %vm297_vm3, %v398_v0, %v416_v8  ;;  %v414_v27 = vrot.slane %v1390_v19, %v1691_v36  ;;  %1455 = vmatprep.subr.mxu0 %v832_v58  ;;  %v830_v60 = vld [vmem:[#allocation7] sm:$0xff]  ;;  %v676_v62 = vunpack.c.l.s4 %v1592_v61 }
 0x104   :  { %v304_v21 = vsel %vm303_vm7, %v288_v3, %v302_v15  ;;  %v418_v23 = vsel %vm299_vm4, %v402_v63, %v417_v20  ;;  %1456 = vmatpush3.msra.mxu0 %v832_v58 }
 0x105   :  { %v306_v24 = vsel %vm305_vm8, %v292_v13, %v304_v21  ;;  %v419_v25 = vsel %vm301_vm5, %v406_v6, %v418_v23  ;;  %1457 = vmatprep.subr.mxu0 %v831_v59  ;;  %v677_v63 = vunpack.c.0.s8 %v676_v62 }
 0x106   :  { %307 = vrot.lane.b32.xlu0 %v306_v24, %s1590_s2  ;;  %v420_v26 = vsel %vm303_vm7, %v410_v22, %v419_v25  ;;  %1458 = vmatpush3.msra.mxu0 %v831_v59 }
 0x107   :  { %v421_v29 = vsel %vm305_vm8, %v414_v27, %v420_v26  ;;  %1459 = vmatprep.subr.mxu0 %v830_v60 }
 0x108   :  { %1460 = vmatpush3.msra.mxu0 %v830_v60 }
 0x10a   :  { %422 = vrot.lane.b32.xlu0 %v421_v29, %s1590_s2 }
 0x178   :  { %v308_v30 = vpop.permute.xlu0 %307 }
 0x179   :  { %1434 = vmatpush3.xpose.msk.msra.mxu1 %vm129_vm0, %v308_v30 }
 0x17a   :  { %1438 = vmatprep.subr.mxu1 %v1588_v28 }
 0x17c   :  { %1436 = vmatmul.mubr.msk.f32.vlgmr.msra.gmra.mxu1 %vm129_vm0, %v306_v24  ;;  %v423_v31 = vpop.permute.xlu0 %422 }
 0x17d   :  { %1439 = vmatpush3.xpose.msk.msra.mxu1 %vm129_vm0, %v423_v31  ;;  %1440 = vmatprep.mubr.msk.f32.mxu1 %vm1589_vm6, %v1588_v28 }
 0x17e   :  { %1443 = vmatprep.subr.mxu1 %v1588_v28 }
 0x180   :  { %1441 = vmatmul.mubr.msk.f32.vlgmr.msra.gmra.mxu1 %vm129_vm0, %v421_v29 }
 0x181   :  { %1445 = vmatprep.mubr.msk.f32.mxu1 %vm1589_vm6, %v1588_v28 }
 0x23c   :  { %v379_v32 = vpop.f32.mrf.mxu1 }
 0x23d   :  { %v499_v33 = vsel %vm498_vm9, %v379_v32, -inf }
 0x23e   :  { %500 = vmax.xlane.f32.xlu1 %v499_v33  ;;  %v1437_v34 = vpop.f32.mrf.mxu1 }
 0x240   :  { %v494_v35 = vpop.f32.mrf.mxu1 }
 0x241   :  { %v502_v37 = vsel %vm498_vm9, %v494_v35, -inf }
 0x242   :  { %503 = vmax.xlane.f32.xlu1 %v502_v37  ;;  %v1442_v38 = vpop.f32.mrf.mxu1 }
 0x253   :  { %521 = vrot.lane.b32.xlu1 %v306_v24, %s1591_s19 }
 0x2c7   :  { %v501_v39 = vpop.xlane.xlu1 %500 }
 0x2c8   :  { %v505_v40 = vsub.f32 %v379_v32, %v501_v39 }
 0x2ca   :  { %v507_v41 = vmul.f32 1.442695, %v505_v40 }
 0x2cb   :  { %v504_v42 = vpop.xlane.xlu1 %503 }
 0x2cc   :  { %1482 = vpow2.f32 %v507_v41  ;;  %v506_v43 = vsub.f32 %v494_v35, %v504_v42 }
 0x2ce   :  { %v509_v44 = vmul.f32 1.442695, %v506_v43 }
 0x2cf   :  { %v522_v45 = vpop.permute.xlu1 %521 }
 0x2d0   :  { %1484 = vpow2.f32 %v509_v44  ;;  %1444 = vmatpush3.msra.mxu1 %v522_v45 }
 0x2d1   :  { %1448 = vmatprep.subr.mxu1 %v1588_v28 }
 0x2d9   :  { %v1483_v46 = vpop.eup %1482 }
 0x2da   :  { %v511_v47 = vsel %vm498_vm9, %v1483_v46, 0.0 }
 0x2db   :  { %512 = vadd.xlane.f32.xlu0 %v511_v47 }
 0x2dd   :  { %v1485_v48 = vpop.eup %1484 }
 0x2de   :  { %v514_v49 = vsel %vm498_vm9, %v1485_v48, 0.0 }
 0x2df   :  { %515 = vadd.xlane.f32.xlu1 %v514_v49 }
 0x2f0   :  { %597 = vrot.lane.b32.xlu1 %v421_v29, %s1591_s19 }
 0x364   :  { %v513_v50 = vpop.xlane.xlu0 %512 }
 0x365   :  { %1486 = vrcp.f32 %v513_v50 }
 0x368   :  { %v516_v51 = vpop.xlane.xlu1 %515 }
 0x369   :  { %1488 = vrcp.f32 %v516_v51 }
 0x36c   :  { %v598_v54 = vpop.permute.xlu1 %597 }
 0x372   :  { %v1487_v52 = vpop.eup %1486 }
 0x373   :  { %v519_v53 = vmul.f32 %v1487_v52, %v1483_v46 }
 0x375   :  { %1446 = vmatmul.mubr.msk.f32.vlgmr.msra.gmra.mxu1 %vm498_vm9, %v519_v53 }
 0x376   :  { %v1489_v55 = vpop.eup %1488  ;;  %1449 = vmatpush3.msra.mxu1 %v598_v54  ;;  %1450 = vmatprep.mubr.msk.f32.mxu1 %vm1589_vm6, %v1588_v28  ;;  %v680_v28 = vsub.s32 %v677_v63, %v1650_v4 }
 0x377   :  { %v520_v56 = vmul.f32 %v1489_v55, %v1485_v48 }
 0x379   :  { %1451 = vmatmul.mubr.msk.f32.vlgmr.msra.gmra.mxu1 %vm498_vm9, %v520_v56 }
 0x435   :  { %v593_v0 = vpop.f32.mrf.mxu1 }
 0x436   :  { %v674_v1 = vcombine.high %v593_v0, %v593_v0  ;;  %v681_v3 = vrot.slane %v593_v0, %v680_v28 }
 0x437   :  { %v1447_v2 = vpop.f32.mrf.mxu1 }
 0x438   :  { %v688_v5 = vrot.slane %v674_v1, %v680_v28  ;;  %v689_v19 = vcombine.high %v681_v3, %v681_v3  ;;  %v697_v24 = vrot.slane %v681_v3, %v680_v28  ;;  %v1397_v2 = vld [vmem:[%s1885_s4] ss:$0 sm:$0xff] }
 0x439   :  { %v669_v6 = vpop.f32.mrf.mxu1 }
 0x43a   :  { %v732_v8 = vcombine.high %v669_v6, %v669_v6  ;;  %v739_v13 = vrot.slane %v669_v6, %v680_v28  ;;  %v690_v20 = vcombine.high %v688_v5, %v688_v5  ;;  %v704_v25 = vrot.slane %v688_v5, %v680_v28 }
 0x43b   :  { %v1452_v15 = vpop.f32.mrf.mxu1  ;;  %v711_v31 = vrot.slane %v689_v19, %v680_v28  ;;  %v719_v39 = vcombine.high %v697_v24, %v697_v24 }
 0x43c   :  { %v746_v21 = vrot.slane %v732_v8, %v680_v28  ;;  %v747_v22 = vcombine.high %v739_v13, %v739_v13  ;;  %v755_v23 = vrot.slane %v739_v13, %v680_v28  ;;  %v718_v32 = vrot.slane %v690_v20, %v680_v28 }
 0x43d   :  { %v720_v40 = vcombine.high %v704_v25, %v704_v25  ;;  %v721_v47 = vcombine.high %v711_v31, %v711_v31 }
 0x43e   :  { %v748_v26 = vcombine.high %v746_v21, %v746_v21  ;;  %v762_v27 = vrot.slane %v746_v21, %v680_v28  ;;  %v769_v29 = vrot.slane %v747_v22, %v680_v28  ;;  %v777_v30 = vcombine.high %v755_v23, %v755_v23 }
 0x43f   :  { %v784_v33 = vrot.slane %v755_v23, %v1691_v36  ;;  %v722_v48 = vcombine.high %v718_v32, %v718_v32 }
 0x440   :  { %v776_v34 = vrot.slane %v748_v26, %v680_v28  ;;  %v778_v35 = vcombine.high %v762_v27, %v762_v27  ;;  %v779_v37 = vcombine.high %v769_v29, %v769_v29  ;;  %v788_v38 = vrot.slane %v769_v29, %v1691_v36 }
 0x441   :  { %v792_v41 = vrot.slane %v777_v30, %v1691_v36  ;;  %v800_v42 = vrot.slane %v762_v27, %v1691_v36  ;;  %v822_v49 = vsel %vm821_vm10, %v697_v24, %v784_v33 }
 0x442   :  { %v780_v43 = vcombine.high %v776_v34, %v776_v34  ;;  %v796_v44 = vrot.slane %v779_v37, %v1691_v36  ;;  %v804_v45 = vrot.slane %v776_v34, %v1691_v36  ;;  %v808_v46 = vrot.slane %v778_v35, %v1691_v36 }
 0x443   :  { %v823_v50 = vsel %vm821_vm10, %v711_v31, %v788_v38  ;;  %v826_v52 = vsel %vm821_vm10, %v704_v25, %v800_v42  ;;  %v824_v55 = vsel %vm821_vm10, %v719_v39, %v792_v41 }
 0x444   :  { %v812_v51 = vrot.slane %v780_v43, %v1691_v36  ;;  %v827_v53 = vsel %vm821_vm10, %v718_v32, %v804_v45  ;;  %v849_v54 = vcombine.low %v822_v49, %v823_v50  ;;  %v825_v57 = vsel %vm821_vm10, %v721_v47, %v796_v44 }
 0x445   :  { %v866_v56 = vcombine.low %v826_v52, %v827_v53  ;;  %v828_v58 = vsel %vm821_vm10, %v720_v40, %v808_v46  ;;  %v850_v60 = vcombine.low %v824_v55, %v825_v57 }
 0x446   :  { %v829_v59 = vsel %vm821_vm10, %v722_v48, %v812_v51  ;;  %v857_v62 = vrot.slane %v849_v54, %v1653_v7 }
 0x447   :  { %v867_v61 = vcombine.low %v828_v58, %v829_v59  ;;  %v864_v36 = vrot.slane %v850_v60, %v1653_v7  ;;  %v874_v63 = vrot.slane %v866_v56, %v1653_v7 }
 0x449   :  { %v881_v28 = vrot.slane %v867_v61, %v1653_v7  ;;  %v865_v0 = vcombine.low %v857_v62, %v864_v36 }
 0x44b   :  { %v882_v1 = vcombine.low %v874_v63, %v881_v28  ;;  %1461 = vmatprep.mubr.msk.f32.mxu0 %vm129_vm0, %v865_v0 }
 0x44d   :  { %1462 = vmatmul.mubr.msk.f32.vlgmr.msra.gmra.mxu0 %vm129_vm0, %v882_v1 }
 0x50d   :  { %v1463_v3 = vpop.f32.mrf.mxu0 }
 0x50e   :  { %v959_v5 = vadd.f32 %v1463_v3, %v1397_v2 }
 0x50f   :  { %v953_v6 = vpop.f32.mrf.mxu0 }
 0x510   :  { %v981_v8 = vcombine.high %v959_v5, %v959_v5  ;;  %v988_v13 = vrot.slane %v959_v5, %v1653_v7  ;;  %v954_v15 = vadd.f32 %v1397_v2, %v953_v6 }
 0x512   :  { %v995_v19 = vrot.slane %v981_v8, %v1653_v7  ;;  %v996_v20 = vcombine.high %v988_v13, %v988_v13  ;;  %v964_v21 = vcombine.high %v954_v15, %v954_v15  ;;  %v1776_v22 = vadd.f32 %v988_v13, %v1665_v14 }
 0x513   :  { %v971_v23 = vrot.slane %v954_v15, %v1653_v7  ;;  %v1593_v8 = vmov 269488144   ;;  %v1594_v15 = vmov 842150450  }
 0x514   :  { %v997_v24 = vcombine.high %v995_v19, %v995_v19  ;;  %v1780_v25 = vadd.f32 %v996_v20, %v1669_v16  ;;  %v1783_v26 = vadd.f32 %v995_v19, %v1671_v17  ;;  %v978_v27 = vrot.slane %v964_v21, %v1653_v7 }
 0x515   :  { %v979_v29 = vcombine.high %v971_v23, %v971_v23  ;;  %v1787_v30 = vadd.f32 %v971_v23, %v1655_v9  ;;  %v1071_v17 = vmul.f32 %v1776_v22, %v1776_v22  ;;  %v1134_v13 = vunpack.c.l.s4 %v1593_v8 }
 0x516   :  { %v1790_v31 = vadd.f32 %v997_v24, %v1673_v18  ;;  %v980_v14 = vcombine.high %v978_v27, %v978_v27  ;;  %v1793_v32 = vadd.f32 %v978_v27, %v1659_v11  ;;  %v1039_v16 = vcombine.low %v1776_v22, %v1780_v25 }
 0x517   :  { %v1798_v33 = vadd.f32 %v979_v29, %v1657_v10  ;;  %v1072_v9 = vmul.f32 %v1780_v25, %v1780_v25  ;;  %v1067_v11 = vmul.f32 %v1787_v30, %v1787_v30  ;;  %v1073_v35 = vmul.f32 %v1783_v26, %v1783_v26 }
 0x518   :  { %v1805_v34 = vadd.f32 %v980_v14, %v1661_v12  ;;  %v1040_v18 = vcombine.low %v1783_v26, %v1790_v31  ;;  %v1047_v10 = vrot.slane %v1039_v16, %v1653_v7  ;;  %v1074_v12 = vmul.f32 %v1790_v31, %v1790_v31 }
 0x519   :  { %v1022_v37 = vcombine.low %v1787_v30, %v1798_v33  ;;  %v1068_v38 = vmul.f32 %v1798_v33, %v1798_v33  ;;  %v1069_v41 = vmul.f32 %v1793_v32, %v1793_v32  ;;  %v1100_v44 = vcombine.low %v1071_v17, %v1072_v9 }
 0x51a   :  { %v1054_v39 = vrot.slane %v1040_v18, %v1653_v7  ;;  %v1023_v40 = vcombine.low %v1793_v32, %v1805_v34  ;;  %v1070_v42 = vmul.f32 %v1805_v34, %v1805_v34  ;;  %v1101_v45 = vcombine.low %v1073_v35, %v1074_v12  ;;  %v1401_v35 = vld [vmem:[%s1887_s6] ss:$0 sm:$0xff] }
 0x51b   :  { %v1083_v43 = vcombine.low %v1067_v11, %v1068_v38  ;;  %v1030_v47 = vrot.slane %v1022_v37, %v1653_v7  ;;  %v1108_v57 = vrot.slane %v1100_v44, %v1653_v7  ;;  %v1141_v19 = vunpack.c.l.s4 %v1594_v15  ;;  %v1400_v11 = vld [vmem:[%s1886_s5] ss:$0 sm:$0xff]  ;;  %s1597_s5 = smov [#allocation8]  }
 0x51c   :  { %v1055_v46 = vcombine.low %v1047_v10, %v1054_v39  ;;  %v1037_v48 = vrot.slane %v1023_v40, %v1653_v7  ;;  %v1084_v49 = vcombine.low %v1069_v41, %v1070_v42  ;;  %v1115_v54 = vrot.slane %v1101_v45, %v1653_v7  ;;  %s1367_s6 = sshll.u32 %s1597_s5, 4  ;;  %s1368_s6 = int_to_ptr.vmem [resolvable:$true] %s1367_s6 }
 0x51d   :  { %v1091_v50 = vrot.slane %v1083_v43, %v1653_v7  ;;  %v1595_v20 = vmov 1414812756   ;;  %v1596_v23 = vmov 1987475062   ;;  %v1135_v16 = vunpack.c.0.s8 %v1134_v13  ;;  %s1554_s25 = scalar_lea.vmem %s1368_s6, 256  ;;  %p1559_p2 = scmp.lt.s32.totalorder %s1368_s6, %s1368_s6 }
 0x51e   :  { %v1061_v51 = vsel %vm129_vm0, %v1055_v46, 0.0  ;;  %v1038_v52 = vcombine.low %v1030_v47, %v1037_v48  ;;  %v1098_v53 = vrot.slane %v1084_v49, %v1653_v7  ;;  %v1116_v59 = vcombine.low %v1108_v57, %v1115_v54  ;;  %p1555_p1 = scmp.ne.s32.totalorder %s1368_s6, %s1554_s25  ;;  %p1560_p3 = scmp.lt.s32.totalorder %s1554_s25, %s1554_s25 }
 0x51f   :  { %1062 = vadd.xlane.f32.xlu0 %v1061_v51  ;;  %v1148_v21 = vunpack.c.l.s4 %v1595_v20  ;;  %v1155_v24 = vunpack.c.l.s4 %v1596_v23  ;;  %v1142_v17 = vunpack.c.0.s8 %v1141_v19  ;;  %v1289_v10 = vcombine.high %v1400_v11, %v1400_v11 }
 0x520   :  { %v1058_v55 = vsel %vm129_vm0, %v1038_v52, 0.0  ;;  %v1099_v56 = vcombine.low %v1091_v50, %v1098_v53  ;;  %v1122_v60 = vsel %vm129_vm0, %v1116_v59, 0.0  ;;  %v1324_v37 = vcombine.high %v1401_v35, %v1401_v35  ;;  %p1561_p4 = por %p1560_p3, %p1559_p2 }
 0x521   :  { %1059 = vadd.xlane.f32.xlu1 %v1058_v55  ;;  %v1149_v9 = vunpack.c.0.s8 %v1148_v21  ;;  %v1156_v18 = vunpack.c.0.s8 %v1155_v24  ;;  %v1138_v38 = vsub.s32 %v1135_v16, %v1650_v4  ;;  %v1145_v12 = vsub.s32 %v1142_v17, %v1650_v4 }
 0x522   :  { %v1119_v58 = vsel %vm129_vm0, %v1099_v56, 0.0  ;;  %v1296_v41 = vrot.slane %v1400_v11, %v1653_v7  ;;  %v1303_v42 = vrot.slane %v1289_v10, %v1653_v7  ;;  %v1331_v43 = vrot.slane %v1401_v35, %v1653_v7  ;;  %p1562_p5 = pnand %p1561_p4, %p1555_p1 }
 0x523   :  { %1120 = vadd.xlane.f32.xlu0 %v1119_v58  ;;  %v1152_v39 = vsub.s32 %v1149_v9, %v1650_v4  ;;  %v1159_v40 = vsub.s32 %v1156_v18, %v1650_v4  ;;  %v1338_v44 = vrot.slane %v1324_v37, %v1653_v7 }
 0x524   :  { %v1304_v49 = vcombine.high %v1296_v41, %v1296_v41  ;;  %v1305_v53 = vcombine.high %v1303_v42, %v1303_v42  ;;  %v1339_v54 = vcombine.high %v1331_v43, %v1331_v43 }
 0x525   :  { %v1340_v55 = vcombine.high %v1338_v44, %v1338_v44 }
 0x527   :  { %1123 = vadd.xlane.f32.xlu0 %v1122_v60 }
 0x5a8   :  { %v1063_v61 = vpop.xlane.xlu0 %1062 }
 0x5a9   :  { %v1066_v28 = vmul.f32 0.03125, %v1063_v61 }
 0x5aa   :  { %v1060_v62 = vpop.xlane.xlu1 %1059 }
 0x5ab   :  { %v1837_v36 = vmul.f32 0.03125, %v1060_v62  ;;  %v1128_v5 = vmul.f32 %v1066_v28, %v1066_v28  ;;  %v1167_v45 = vrot.slane %v1066_v28, %v1138_v38  ;;  %v1174_v46 = vrot.slane %v1066_v28, %v1145_v12 }
 0x5ac   :  { %v1121_v63 = vpop.xlane.xlu0 %1120  ;;  %v1181_v47 = vrot.slane %v1066_v28, %v1152_v39  ;;  %v1188_v48 = vrot.slane %v1066_v28, %v1159_v40 }
 0x5ad   :  { %v1125_v0 = vmul.f32 0.03125, %v1121_v63  ;;  %v1127_v1 = vmul.f32 %v1837_v36, %v1837_v36  ;;  %v1139_v50 = vrot.slane %v1837_v36, %v1138_v38  ;;  %v1146_v51 = vrot.slane %v1837_v36, %v1145_v12 }
 0x5ae   :  { %v1153_v52 = vrot.slane %v1837_v36, %v1152_v39  ;;  %v1160_v4 = vrot.slane %v1837_v36, %v1159_v40  ;;  %v1201_v7 = vsub.f32 %v1776_v22, %v1167_v45  ;;  %v1202_v57 = vsub.f32 %v1780_v25, %v1174_v46 }
 0x5af   :  { %v1129_v3 = vsub.f32 %v1125_v0, %v1127_v1  ;;  %v1203_v58 = vsub.f32 %v1783_v26, %v1181_v47  ;;  %v1204_v59 = vsub.f32 %v1790_v31, %v1188_v48  ;;  %v1197_v36 = vsub.f32 %v1787_v30, %v1139_v50 }
 0x5b0   :  { %v1124_v2 = vpop.xlane.xlu0 %1123  ;;  %v1198_v0 = vsub.f32 %v1798_v33, %v1146_v51  ;;  %v1199_v1 = vsub.f32 %v1793_v32, %v1153_v52 }
 0x5b1   :  { %v1126_v6 = vmul.f32 0.03125, %v1124_v2  ;;  %v1205_v27 = vadd.f32 1e-05, %v1129_v3  ;;  %v1200_v2 = vsub.f32 %v1805_v34, %v1160_v4 }
 0x5b3   :  { %v1130_v29 = vsub.f32 %v1126_v6, %v1128_v5  ;;  %1490 = vrsqrt.f32 %v1205_v27 }
 0x5b5   :  { %v1206_v14 = vadd.f32 1e-05, %v1130_v29 }
 0x5b7   :  { %1492 = vrsqrt.f32 %v1206_v14 }
 0x5c0   :  { %v1491_v56 = vpop.eup %1490 }
 0x5c1   :  { %v1217_v60 = vrot.slane %v1491_v56, %v1138_v38  ;;  %v1224_v61 = vrot.slane %v1491_v56, %v1145_v12  ;;  %v1231_v62 = vrot.slane %v1491_v56, %v1152_v39  ;;  %v1238_v63 = vrot.slane %v1491_v56, %v1159_v40 }
 0x5c3   :  { %v1275_v26 = vmul.f32 %v1217_v60, %v1197_v36  ;;  %v1276_v6 = vmul.f32 %v1224_v61, %v1198_v0  ;;  %v1277_v31 = vmul.f32 %v1231_v62, %v1199_v1  ;;  %v1278_v8 = vmul.f32 %v1238_v63, %v1200_v2 }
 0x5c4   :  { %v1493_v28 = vpop.eup %1492 }
 0x5c5   :  { %v1245_v22 = vrot.slane %v1493_v28, %v1138_v38  ;;  %v1252_v3 = vrot.slane %v1493_v28, %v1145_v12  ;;  %v1259_v25 = vrot.slane %v1493_v28, %v1152_v39  ;;  %v1266_v5 = vrot.slane %v1493_v28, %v1159_v40 }
 0x5c6   :  { %v1310_v21 = vmul.f32 %v1296_v41, %v1275_v26  ;;  %v1311_v30 = vmul.f32 %v1304_v49, %v1276_v6  ;;  %v1312_v23 = vmul.f32 %v1303_v42, %v1277_v31  ;;  %v1313_v33 = vmul.f32 %v1305_v53, %v1278_v8 }
 0x5c7   :  { %v1279_v13 = vmul.f32 %v1245_v22, %v1201_v7  ;;  %v1280_v15 = vmul.f32 %v1252_v3, %v1202_v57  ;;  %v1281_v19 = vmul.f32 %v1259_v25, %v1203_v58  ;;  %v1282_v20 = vmul.f32 %v1266_v5, %v1204_v59 }
 0x5c8   :  { %v1345_v29 = vadd.f32 %v1331_v43, %v1310_v21  ;;  %v1346_v14 = vadd.f32 %v1339_v54, %v1311_v30  ;;  %v1347_v16 = vadd.f32 %v1338_v44, %v1312_v23  ;;  %v1348_v17 = vadd.f32 %v1340_v55, %v1313_v33 }
 0x5c9   :  { %v1314_v32 = vmul.f32 %v1296_v41, %v1279_v13  ;;  %v1315_v34 = vmul.f32 %v1304_v49, %v1280_v15  ;;  %v1316_v24 = vmul.f32 %v1303_v42, %v1281_v19  ;;  %v1317_v27 = vmul.f32 %v1305_v53, %v1282_v20 }
 0x5ca   :  { %1354 = vst.msk [vmem:[#allocation8] sm:$0x3] %vm1353_vm11, %v1345_v29  ;;  %1355 = vst.msk [vmem:[#allocation8 + $0x2] sm:$0x3] %vm1353_vm11, %v1346_v14 }
 0x5cb   :  { %v1349_v9 = vadd.f32 %v1331_v43, %v1314_v32  ;;  %v1350_v18 = vadd.f32 %v1339_v54, %v1315_v34  ;;  %v1351_v11 = vadd.f32 %v1338_v44, %v1316_v24  ;;  %v1352_v35 = vadd.f32 %v1340_v55, %v1317_v27  ;;  %1356 = vst.msk [vmem:[#allocation8 + $0x4] sm:$0x3] %vm1353_vm11, %v1347_v16 }
 0x5cc   :  { %1357 = vst.msk [vmem:[#allocation8 + $0x6] sm:$0x3] %vm1353_vm11, %v1348_v17 }
 0x5cd   :  { %1358 = vst.msk [vmem:[#allocation8 + $0x8] sm:$0x3] %vm1353_vm11, %v1349_v9  ;;  %1359 = vst.msk [vmem:[#allocation8 + $0xa] sm:$0x3] %vm1353_vm11, %v1350_v18 }
 0x5ce   :  { %1360 = vst.msk [vmem:[#allocation8 + $0xc] sm:$0x3] %vm1353_vm11, %v1351_v11  ;;  %1361 = vst.msk [vmem:[#allocation8 + $0xe] sm:$0x3] %vm1353_vm11, %v1352_v35 }
 0x5cf   :  { %1565 = shalt.err (!%p1562_p5)
}
 0x5d0   :  { %1373 = dma.vmem_to_hbm [thread:$0]  %s1368_s6, 256, %s1888_s7, [#allocation4], %s1584_s11, %s1584_s11, %s1585_s12  }
 0x5d1   :  { %1578 = dma.done.wait [#allocation4], 256  }
 0x5d2   :  { %1579 = vsyncadd [#allocation4], 4294967040 }
 0x5d3   :  { %1377 = vsyncpa [#allocation3], 1 }
 0x5d4   :  { %1378 = vsyncpa [#allocation6], 1 }
 0x5d5   :  { %1379 = vsyncpa [#allocation4], 1 }

</bundles_post_ra>
